<compile_context>
chip_gen: v5e
topology: v5e:2x2
jax: 0.10.0
libtpu: 0.0.40
codegen_flags: <defaults>
</compile_context>

<pallas_src>
import jax
import jax.numpy as jnp
from jax.experimental import pallas as pl
from jax.experimental.pallas import tpu as pltpu


def _round_up(x, m):
    return ((x + m - 1) // m) * m


def _gen_params():
    """Generation-aware VMEM budget and matmul row tile."""
    try:
        cap = int(pltpu.get_tpu_info().vmem_capacity_bytes)
    except Exception:
        cap = 64 * 1024 * 1024
    if cap >= 96 * 1024 * 1024:            # v5e / v6e: 128 MiB physical VMEM
        return 96 * 1024 * 1024, 512
    return 40 * 1024 * 1024, 256           # v7x: 64 MiB physical per TensorCore


VMEM_LIMIT, MM_TM = _gen_params()


# ---------------------------------------------------------------------------
# Path B kernel: im2col-matmul + bias(folded BN) [+ residual] [+ ReLU]
# (strided 3x3 first-blocks, 1x1 downsamples, stem with cin=1, compress conv)
# ---------------------------------------------------------------------------
def _make_mm_kernel(relu, has_residual):
    def kernel(*refs):
        if has_residual:
            x_ref, w_ref, b_ref, r_ref, o_ref = refs
        else:
            x_ref, w_ref, b_ref, o_ref = refs
        acc = jnp.dot(x_ref[...], w_ref[...], preferred_element_type=jnp.float32)
        acc = acc + b_ref[...]                       # folded BatchNorm bias (f32)
        if has_residual:
            acc = acc + r_ref[...].astype(jnp.float32)
        if relu:
            acc = jnp.maximum(acc, 0.0)
        o_ref[...] = acc.astype(o_ref.dtype)
    return kernel


def _matmul_bias(x, w, b, residual=None, relu=True):
    """x:(M,K)bf16 @ w:(K,N)bf16 + b:(N,)f32 [+ residual:(M,N)bf16] [ReLU] -> bf16."""
    M, K = x.shape
    N = w.shape[1]
    tm = min(MM_TM, _round_up(M, 8))
    tn = 256 if N >= 256 else N
    # cout tiles outermost: weight/bias block index constant over the inner M sweep.
    grid = (pl.cdiv(N, tn), pl.cdiv(M, tm))
    args = [x, w, b.reshape(1, N)]
    in_specs = [
        pl.BlockSpec((tm, K), lambda j, i: (i, 0)),
        pl.BlockSpec((K, tn), lambda j, i: (0, j)),
        pl.BlockSpec((1, tn), lambda j, i: (0, j)),
    ]
    if residual is not None:
        args.append(residual)
        in_specs.append(pl.BlockSpec((tm, tn), lambda j, i: (i, j)))
    bytes_accessed = int(2 * (M * K + K * N + M * N) + 4 * N
                         + (2 * M * N if residual is not None else 0))
    out = pl.pallas_call(
        _make_mm_kernel(relu, residual is not None),
        out_shape=jax.ShapeDtypeStruct((M, N), jnp.bfloat16),
        grid=grid,
        in_specs=in_specs,
        out_specs=pl.BlockSpec((tm, tn), lambda j, i: (i, j)),
        compiler_params=pltpu.CompilerParams(
            dimension_semantics=("parallel", "parallel"),
            vmem_limit_bytes=VMEM_LIMIT),
        cost_estimate=pl.CostEstimate(flops=int(2 * M * K * N),
                                      transcendentals=0,
                                      bytes_accessed=bytes_accessed),
    )(*args)
    return out


def _im2col(x_nhwc, kh, kw, stride, padding):
    sh, sw = stride
    ph, pw = padding
    x = jnp.pad(x_nhwc, ((0, 0), (ph, ph), (pw, pw), (0, 0)))
    n, hh, ww, c = x.shape
    ho = (hh - kh) // sh + 1
    wo = (ww - kw) // sw + 1
    cols = []
    for i in range(kh):
        for j in range(kw):
            cols.append(x[:, i:i + sh * ho:sh, j:j + sw * wo:sw, :])
    cols = jnp.concatenate(cols, axis=-1)            # (n, ho, wo, kh*kw*c)
    return cols.reshape(n * ho * wo, kh * kw * c), (n, ho, wo)


# ---------------------------------------------------------------------------
# Path A kernel: direct stride-1 3x3 conv, spatially tiled (row bands) with halo.
# Input per step: (tile_len, C) = one row band of the flattened image padded by
# (W+1) rows on each side.  Output per step: (hw_t, tn) with hw_t = th*W.
# W-boundary wrap of the dj=0 / dj=2 taps is zeroed on the lhs with an iota mask
# (tile starts are multiples of W, so the mask is tile-invariant).
# ---------------------------------------------------------------------------
def _make_direct3x3_kernel(W, hw_t, cout_t, fuse_dj, relu, has_residual):
    def kernel(*refs):
        if has_residual:
            x_ref, w_ref, b_ref, r_ref, o_ref = refs
        else:
            x_ref, w_ref, b_ref, o_ref = refs
        col = jax.lax.broadcasted_iota(jnp.int32, (hw_t, 1), 0) % W
        mask_l = col != 0            # left-neighbor tap invalid at w == 0
        mask_r = col != (W - 1)      # right-neighbor tap invalid at w == W-1
        # folded BatchNorm bias initializes the f32 accumulator
        acc = jnp.broadcast_to(b_ref[...], (hw_t, cout_t)).astype(jnp.float32)
        if fuse_dj:
            # fuse the 3 dj taps of each di into one K=3C matmul (lane-aligned)
            for di in range(3):
                base = di * W
                x0 = jnp.where(mask_l, x_ref[base:base + hw_t, :], 0.0)
                x1 = x_ref[base + 1:base + 1 + hw_t, :]
                x2 = jnp.where(mask_r, x_ref[base + 2:base + 2 + hw_t, :], 0.0)
                lhs = jnp.concatenate([x0, x1, x2], axis=-1)
                acc = acc + jnp.dot(lhs, w_ref[di],
                                    preferred_element_type=jnp.float32)
        else:
            for di in range(3):
                for dj in range(3):
                    lhs = x_ref[di * W + dj:di * W + dj + hw_t, :]
                    if dj == 0:
                        lhs = jnp.where(mask_l, lhs, 0.0)
                    elif dj == 2:
                        lhs = jnp.where(mask_r, lhs, 0.0)
                    acc = acc + jnp.dot(lhs, w_ref[di * 3 + dj],
                                        preferred_element_type=jnp.float32)
        if has_residual:
            acc = acc + r_ref[...].astype(jnp.float32)
        if relu:
            acc = jnp.maximum(acc, 0.0)
        o_ref[...] = acc.astype(o_ref.dtype)
    return kernel


def _pick_row_tile(H, W, target_rows=1024):
    """Rows per band such that th | H and th*W is roughly `target_rows`."""
    th = max(1, min(H, max(1, target_rows // max(W, 1))))
    while H % th:
        th -= 1
    return th


def _conv3x3_s1_direct(x_nhwc, p, th, tn, relu=True, residual=None):
    n, H, W, C = x_nhwc.shape
    cout = p["w"].shape[-1]
    nt = H // th
    hw_t = th * W
    tile_len = hw_t + 2 * W + 2

    # flatten spatial dims, zero-pad by (W+1) rows each side, materialize halo'd
    # row-band tiles (n, nt, tile_len, C).  Halo overhead ~2/th of the input bytes.
    xf = x_nhwc.reshape(n, H * W, C)
    xfp = jnp.pad(xf, ((0, 0), (W + 1, W + 1), (0, 0)))
    xt = jnp.stack([xfp[:, i * hw_t:i * hw_t + tile_len, :] for i in range(nt)],
                   axis=1)

    fuse_dj = (C % 128 == 0)
    wk = (p["w"].astype(jnp.float32) * p["scale"]).astype(jnp.bfloat16)
    w_taps = wk.reshape(3, 3 * C, cout) if fuse_dj else wk.reshape(9, C, cout)
    bias2d = p["bias"].reshape(1, cout).astype(jnp.float32)

    # cout-tile axis outermost: weight/bias block index constant over (batch, band).
    grid = (pl.cdiv(cout, tn), n, nt)
    args = [xt, w_taps, bias2d]
    in_specs = [
        pl.BlockSpec((None, None, tile_len, C), lambda j, b, i: (b, i, 0, 0)),
        pl.BlockSpec(w_taps.shape[:2] + (tn,), lambda j, b, i: (0, 0, j)),
        pl.BlockSpec((1, tn), lambda j, b, i: (0, j)),
    ]
    if residual is not None:
        args.append(residual.reshape(n, nt, hw_t, cout))
        in_specs.append(pl.BlockSpec((None, None, hw_t, tn),
                                     lambda j, b, i: (b, i, 0, j)))

    n_j = pl.cdiv(cout, tn)
    bytes_accessed = int(2 * xt.size * n_j + 2 * w_taps.size + 4 * cout
                         + 2 * n * H * W * cout
                         * (2 if residual is not None else 1))
    out = pl.pallas_call(
        _make_direct3x3_kernel(W, hw_t, tn, fuse_dj, relu, residual is not None),
        out_shape=jax.ShapeDtypeStruct((n, nt, hw_t, cout), jnp.bfloat16),
        grid=grid,
        in_specs=in_specs,
        out_specs=pl.BlockSpec((None, None, hw_t, tn), lambda j, b, i: (b, i, 0, j)),
        compiler_params=pltpu.CompilerParams(
            dimension_semantics=("parallel", "parallel", "parallel"),
            vmem_limit_bytes=VMEM_LIMIT),
        cost_estimate=pl.CostEstimate(flops=int(2 * n * H * W * 9 * C * cout),
                                      transcendentals=0,
                                      bytes_accessed=bytes_accessed),
    )(*args)
    return out.reshape(n, H, W, cout)


# ---------------------------------------------------------------------------
# conv + folded BN [+ residual] [+ ReLU] dispatcher (NHWC in/out, bf16)
# ---------------------------------------------------------------------------
def conv_bn(x_nhwc, p, stride, padding, relu=True, residual=None):
    kh, kw, cin, cout = p["w"].shape
    n, H, W, _ = x_nhwc.shape
    stride = tuple(stride)
    padding = tuple(padding)
    if (kh, kw) == (3, 3) and stride == (1, 1) and padding == (1, 1) and cin >= 8:
        th = _pick_row_tile(H, W)
        hw_t = th * W
        tile_len = hw_t + 2 * W + 2
        tn = 256 if cout >= 256 else cout
        # rough double-buffered per-step working set (bytes); fall back otherwise
        work = (4 * tile_len * cin         # input row band (bf16, 2 buffers)
                + 36 * cin * tn            # folded weights (bf16, 2 buffers)
                + 8 * hw_t * tn            # output + residual (bf16, 2 buffers)
                + 4 * hw_t * tn            # f32 accumulator
                + 12 * hw_t * cin)         # lhs staging temporaries
        if work < int(0.6 * VMEM_LIMIT):
            return _conv3x3_s1_direct(x_nhwc, p, th, tn, relu=relu,
                                      residual=residual)
    # im2col fallback (strided convs, 1x1 downsamples, stem, compress conv)
    cols, (n, ho, wo) = _im2col(x_nhwc, kh, kw, stride, padding)
    wmat = (p["w"].astype(jnp.float32) * p["scale"]) \
        .reshape(kh * kw * cin, cout).astype(jnp.bfloat16)
    res2d = residual.reshape(n * ho * wo, cout) if residual is not None else None
    out = _matmul_bias(cols, wmat, p["bias"], residual=res2d, relu=relu)
    return out.reshape(n, ho, wo, cout)


# ---------------------------------------------------------------------------
# Deterministic parameter init (conv weight + BatchNorm folded to scale/bias)
# ---------------------------------------------------------------------------
def _init_conv_bn(key, kh, kw, cin, cout):
    k1, k2, k3, k4, k5 = jax.random.split(key, 5)
    fan_in = kh * kw * cin
    w = jax.random.normal(k1, (kh, kw, cin, cout), jnp.float32) * (2.0 / fan_in) ** 0.5
    gamma = 1.0 + 0.1 * jax.random.normal(k2, (cout,), jnp.float32)
    beta = 0.1 * jax.random.normal(k3, (cout,), jnp.float32)
    mean = 0.1 * jax.random.normal(k4, (cout,), jnp.float32)
    var = jnp.abs(jax.random.normal(k5, (cout,), jnp.float32)) + 1.0
    scale = gamma / jnp.sqrt(var + 1e-5)
    bias = beta - mean * scale
    return {"w": w, "scale": scale, "bias": bias}


# ---------------------------------------------------------------------------
# Pure-JAX reference for the conv building block (for correctness checks)
# ---------------------------------------------------------------------------
def _conv_bn_ref(x_nhwc, p, stride, padding, relu=True, residual=None):
    w = (p["w"].astype(jnp.float32) * p["scale"]).astype(jnp.bfloat16) \
        .astype(jnp.float32)
    x = x_nhwc.astype(jnp.float32)
    out = jax.lax.conv_general_dilated(
        x, w, window_strides=stride,
        padding=[(padding[0], padding[0]), (padding[1], padding[1])],
        dimension_numbers=("NHWC", "HWIO", "NHWC"))
    out = out + p["bias"].reshape(1, 1, 1, -1)
    if residual is not None:
        out = out + residual.astype(jnp.float32)
    if relu:
        out = jnp.maximum(out, 0.0)
    return out


def _check_close(name, got_bf16, ref_f32, atol=0.1, rtol=0.02):
    got = got_bf16.astype(jnp.float32)
    err = float(jnp.max(jnp.abs(got - ref_f32)))
    scale = float(jnp.max(jnp.abs(ref_f32)))
    assert err <= atol + rtol * scale, f"{name}: err={err:.4f} scale={scale:.4f}"


# ---------------------------------------------------------------------------
# neko_cco_Feature_Extractor (features path of res_naive_lens45)
# ---------------------------------------------------------------------------
class NekoCCOFeatureExtractorPallas:
    def __init__(self, strides, compress_layer, input_shape, hardness=2,
                 oupch=512, expf=1, layers=(3, 4, 6, 6, 3),
                 param_key=jax.random.PRNGKey(0)):
        assert len(strides) >= 6
        self.strides = [tuple(s) for s in strides]
        self.compress_layer = compress_layer
        self.input_shape = input_shape
        self.hardness = hardness  # unused (lens-grid branch only)

        self._kidx = 0
        self._base_key = param_key

        def nk():
            self._kidx += 1
            return jax.random.fold_in(self._base_key, self._kidx)

        cin = input_shape[0]
        planes_list = [int(32 * expf), int(64 * expf), int(128 * expf),
                       int(256 * expf), int(oupch)]
        inplanes = planes_list[0]

        self.conv1 = _init_conv_bn(nk(), 3, 3, cin, inplanes)
        self.layers_params = []
        for planes, nblocks, stride in zip(planes_list, layers, self.strides[1:6]):
            blocks = []
            for bi in range(nblocks):
                s = stride if bi == 0 else (1, 1)
                blk = {
                    "conv1": _init_conv_bn(nk(), 3, 3, inplanes, planes),
                    "conv2": _init_conv_bn(nk(), 3, 3, planes, planes),
                }
                if s != (1, 1) or inplanes != planes:
                    blk["down"] = _init_conv_bn(nk(), 1, 1, inplanes, planes)
                blocks.append(blk)
                inplanes = planes
            self.layers_params.append(blocks)

        if compress_layer:
            # compress conv: kernel (3,1), no padding
            self.compress = _init_conv_bn(nk(), 3, 1, inplanes, max(1, inplanes // 2))

    def _run_layer(self, x, blocks, stride):
        for bi, blk in enumerate(blocks):
            s = stride if bi == 0 else (1, 1)
            identity = x
            out = conv_bn(x, blk["conv1"], s, (1, 1), relu=True)
            if "down" in blk:
                identity = conv_bn(x, blk["down"], s, (0, 0), relu=False)
            # conv2 + BN + residual add + ReLU fused in a single Pallas kernel
            x = conv_bn(out, blk["conv2"], (1, 1), (1, 1), relu=True,
                        residual=identity)
        return x

    def forward(self, x_nchw):
        # layout: NCHW f32 in -> NHWC bf16 compute -> NCHW f32 out
        x = jnp.transpose(x_nchw, (0, 2, 3, 1)).astype(jnp.bfloat16)
        out_features = []
        x = conv_bn(x, self.conv1, self.strides[0], (1, 1), relu=True)
        tmp_shape = x.shape[1:3]
        # layers 1..4: collect feature when spatial resolution changes
        for li in range(4):
            x = self._run_layer(x, self.layers_params[li], self.strides[li + 1])
            if x.shape[1:3] != tmp_shape:
                tmp_shape = x.shape[1:3]
                out_features.append(x)
        # layer 5
        x = self._run_layer(x, self.layers_params[4], self.strides[5])
        if not self.compress_layer:
            out_features.append(x)
        else:
            if x.shape[1:3] != tmp_shape:
                out_features.append(x)
            x = conv_bn(x, self.compress, (1, 1), (0, 0), relu=True)
            out_features.append(x)
        # transpose + f32 cast fuse into one XLA op per feature
        return [jnp.transpose(f, (0, 3, 1, 2)).astype(jnp.float32)
                for f in out_features]


# ---------------------------------------------------------------------------
if __name__ == "__main__":
    key = jax.random.PRNGKey(0)

    def rnd(k, shape):
        return jax.random.uniform(k, shape, jnp.float32)

    # --- unit checks of the conv building block against lax.conv (f32) ---
    # (a) direct 3x3 path, 9-tap variant (C not multiple of 128), residual + ReLU
    pa = _init_conv_bn(jax.random.fold_in(key, 1), 3, 3, 64, 64)
    xa = rnd(jax.random.fold_in(key, 2), (2, 8, 16, 64)).astype(jnp.bfloat16)
    ra = rnd(jax.random.fold_in(key, 3), (2, 8, 16, 64)).astype(jnp.bfloat16)
    _check_close("direct3x3/9tap",
                 conv_bn(xa, pa, (1, 1), (1, 1), relu=True, residual=ra),
                 _conv_bn_ref(xa, pa, (1, 1), (1, 1), relu=True, residual=ra))

    # (b) direct 3x3 path, fused K=3C variant (C multiple of 128)
    pb = _init_conv_bn(jax.random.fold_in(key, 4), 3, 3, 128, 256)
    xb = rnd(jax.random.fold_in(key, 5), (2, 8, 16, 128)).astype(jnp.bfloat16)
    _check_close("direct3x3/fusedK",
                 conv_bn(xb, pb, (1, 1), (1, 1), relu=True),
                 _conv_bn_ref(xb, pb, (1, 1), (1, 1), relu=True))

    # (c) strided 3x3 (im2col-matmul path)
    pc = _init_conv_bn(jax.random.fold_in(key, 6), 3, 3, 32, 64)
    xc = rnd(jax.random.fold_in(key, 7), (2, 8, 16, 32)).astype(jnp.bfloat16)
    _check_close("strided3x3/im2col",
                 conv_bn(xc, pc, (2, 2), (1, 1), relu=True),
                 _conv_bn_ref(xc, pc, (2, 2), (1, 1), relu=True))

    # --- full feature extractor (small but structurally faithful config) ---
    input_shape = (1, 16, 64)                                 # (C, H, W)
    strides = [(1, 1), (2, 2), (2, 2), (2, 2), (1, 1), (1, 1)]
    model = NekoCCOFeatureExtractorPallas(
        strides=strides, compress_layer=False, input_shape=input_shape,
        hardness=2, oupch=64, expf=0.25, layers=(3, 4, 6, 6, 3),
        param_key=key)

    x = jax.random.uniform(jax.random.fold_in(key, 12345),
                           (2, *input_shape), jnp.float32)

    fwd = jax.jit(model.forward)
    feats = fwd(x)
    feats = jax.block_until_ready(feats)
    assert all(f.ndim == 4 for f in feats) and len(feats) >= 1
    assert all(bool(jnp.isfinite(f).all()) for f in feats)
    print("KERNEL_OK")
</pallas_src>

<mosaic_0001>
module attributes {stable_mosaic.version = 11 : i64} {
  func.func @kernel(%arg0: i32, %arg1: i32, %arg2: i32, %arg3: memref<1x1x162x64xbf16, #tpu.memory_space<vmem>>, %arg4: memref<9x64x64xbf16, #tpu.memory_space<vmem>>, %arg5: memref<1x64xf32, #tpu.memory_space<vmem>>, %arg6: memref<1x1x128x64xbf16, #tpu.memory_space<vmem>>, %arg7: memref<1x1x128x64xbf16, #tpu.memory_space<vmem>>) attributes {dimension_semantics = [#tpu.dimension_semantics<parallel>, #tpu.dimension_semantics<parallel>, #tpu.dimension_semantics<parallel>], iteration_bounds = array<i64: 1, 2, 1>, scalar_prefetch = 0 : i64, scratch_operands = 0 : i64, tpu.core_type = #tpu.core_type<tc>, window_params = [{transform_indices = @transform_0, window_bounds = array<i64: 1, 1, 162, 64>}, {transform_indices = @transform_1, window_bounds = array<i64: 9, 64, 64>}, {transform_indices = @transform_2, window_bounds = array<i64: 1, 64>}, {transform_indices = @transform_3, window_bounds = array<i64: 1, 1, 128, 64>}, {transform_indices = @transform_4, window_bounds = array<i64: 1, 1, 128, 64>}]} {
    %0 = tpu.iota {dimensions = array<i32: 0>} : vector<128x1xi32>
    %c16_i32 = arith.constant 16 : i32
    %c0_i32 = arith.constant 0 : i32
    %1 = arith.cmpi eq, %c16_i32, %c0_i32 : i32
    %c1_i32 = arith.constant 1 : i32
    %2 = arith.select %1, %c1_i32, %c16_i32 : i32
    %3 = vector.broadcast %2 : i32 to vector<128x1xi32>
    %4 = arith.remsi %0, %3 : vector<128x1xi32>
    %c0_i32_0 = arith.constant 0 : i32
    %5 = vector.broadcast %c0_i32_0 : i32 to vector<128x1xi32>
    %6 = arith.cmpi ne, %4, %5 : vector<128x1xi32>
    %c0_i32_1 = arith.constant 0 : i32
    %7 = vector.broadcast %c0_i32_1 : i32 to vector<128x1xi32>
    %8 = arith.cmpi slt, %4, %7 : vector<128x1xi32>
    %c0_i32_2 = arith.constant 0 : i32
    %9 = arith.cmpi slt, %2, %c0_i32_2 : i32
    %10 = vector.broadcast %9 : i1 to vector<128x1xi1>
    %11 = vector.broadcast %10 : vector<128x1xi1> to vector<128x1xi1>
    %12 = arith.xori %8, %11 : vector<128x1xi1>
    %13 = arith.andi %12, %6 : vector<128x1xi1>
    %14 = vector.broadcast %2 : i32 to vector<128x1xi32>
    %15 = arith.addi %4, %14 : vector<128x1xi32>
    %16 = arith.select %13, %15, %4 : vector<128x1xi1>, vector<128x1xi32>
    %c0_i32_3 = arith.constant 0 : i32
    %17 = vector.broadcast %c0_i32_3 : i32 to vector<128x1xi32>
    %18 = arith.cmpi ne, %16, %17 : vector<128x1xi32>
    %c15_i32 = arith.constant 15 : i32
    %19 = vector.broadcast %c15_i32 : i32 to vector<128x1xi32>
    %20 = arith.cmpi ne, %16, %19 : vector<128x1xi32>
    %c0 = arith.constant 0 : index
    %c0_4 = arith.constant 0 : index
    %21 = vector.load %arg5[%c0, %c0_4] : memref<1x64xf32, #tpu.memory_space<vmem>>, vector<1x64xf32>
    %22 = vector.shape_cast %21 : vector<1x64xf32> to vector<1x64xf32>
    %23 = vector.broadcast %22 : vector<1x64xf32> to vector<128x64xf32>
    %c0_5 = arith.constant 0 : index
    %c0_6 = arith.constant 0 : index
    %c0_7 = arith.constant 0 : index
    %c0_8 = arith.constant 0 : index
    %24 = vector.load %arg3[%c0_5, %c0_6, %c0_7, %c0_8] : memref<1x1x162x64xbf16, #tpu.memory_space<vmem>>, vector<1x1x128x64xbf16>
    %25 = vector.shape_cast %24 : vector<1x1x128x64xbf16> to vector<128x64xbf16>
    %cst = arith.constant 0.000000e+00 : f32
    %26 = arith.truncf %cst : f32 to bf16
    %27 = vector.shape_cast %18 : vector<128x1xi1> to vector<128x1xi1>
    %28 = vector.broadcast %27 : vector<128x1xi1> to vector<128x64xi1>
    %29 = vector.broadcast %26 : bf16 to vector<128x64xbf16>
    %30 = arith.select %28, %25, %29 : vector<128x64xi1>, vector<128x64xbf16>
    %c0_9 = arith.constant 0 : index
    %c0_10 = arith.constant 0 : index
    %c0_11 = arith.constant 0 : index
    %31 = vector.load %arg4[%c0_9, %c0_10, %c0_11] : memref<9x64x64xbf16, #tpu.memory_space<vmem>>, vector<1x64x64xbf16>
    %32 = vector.shape_cast %31 : vector<1x64x64xbf16> to vector<64x64xbf16>
    %cst_12 = arith.constant dense<0.000000e+00> : vector<128x64xf32>
    %33 = tpu.matmul %30, %32, %cst_12 {dimension_numbers = #tpu.dot_dimension_numbers<[1], [0], [0], [1], [0, 0, 1, 1], [], []>} : vector<128x64xbf16>, vector<64x64xbf16>, vector<128x64xf32> -> vector<128x64xf32>
    %34 = arith.addf %23, %33 : vector<128x64xf32>
    %c0_13 = arith.constant 0 : index
    %c0_14 = arith.constant 0 : index
    %c1 = arith.constant 1 : index
    %c0_15 = arith.constant 0 : index
    %35 = vector.load %arg3[%c0_13, %c0_14, %c1, %c0_15] : memref<1x1x162x64xbf16, #tpu.memory_space<vmem>>, vector<1x1x128x64xbf16>
    %36 = vector.shape_cast %35 : vector<1x1x128x64xbf16> to vector<128x64xbf16>
    %c1_16 = arith.constant 1 : index
    %c0_17 = arith.constant 0 : index
    %c0_18 = arith.constant 0 : index
    %37 = vector.load %arg4[%c1_16, %c0_17, %c0_18] : memref<9x64x64xbf16, #tpu.memory_space<vmem>>, vector<1x64x64xbf16>
    %38 = vector.shape_cast %37 : vector<1x64x64xbf16> to vector<64x64xbf16>
    %cst_19 = arith.constant dense<0.000000e+00> : vector<128x64xf32>
    %39 = tpu.matmul %36, %38, %cst_19 {dimension_numbers = #tpu.dot_dimension_numbers<[1], [0], [0], [1], [0, 0, 1, 1], [], []>} : vector<128x64xbf16>, vector<64x64xbf16>, vector<128x64xf32> -> vector<128x64xf32>
    %40 = arith.addf %34, %39 : vector<128x64xf32>
    %c0_20 = arith.constant 0 : index
    %c0_21 = arith.constant 0 : index
    %c2 = arith.constant 2 : index
    %c0_22 = arith.constant 0 : index
    %41 = vector.load %arg3[%c0_20, %c0_21, %c2, %c0_22] : memref<1x1x162x64xbf16, #tpu.memory_space<vmem>>, vector<1x1x128x64xbf16>
    %42 = vector.shape_cast %41 : vector<1x1x128x64xbf16> to vector<128x64xbf16>
    %cst_23 = arith.constant 0.000000e+00 : f32
    %43 = arith.truncf %cst_23 : f32 to bf16
    %44 = vector.shape_cast %20 : vector<128x1xi1> to vector<128x1xi1>
    %45 = vector.broadcast %44 : vector<128x1xi1> to vector<128x64xi1>
    %46 = vector.broadcast %43 : bf16 to vector<128x64xbf16>
    %47 = arith.select %45, %42, %46 : vector<128x64xi1>, vector<128x64xbf16>
    %c2_24 = arith.constant 2 : index
    %c0_25 = arith.constant 0 : index
    %c0_26 = arith.constant 0 : index
    %48 = vector.load %arg4[%c2_24, %c0_25, %c0_26] : memref<9x64x64xbf16, #tpu.memory_space<vmem>>, vector<1x64x64xbf16>
    %49 = vector.shape_cast %48 : vector<1x64x64xbf16> to vector<64x64xbf16>
    %cst_27 = arith.constant dense<0.000000e+00> : vector<128x64xf32>
    %50 = tpu.matmul %47, %49, %cst_27 {dimension_numbers = #tpu.dot_dimension_numbers<[1], [0], [0], [1], [0, 0, 1, 1], [], []>} : vector<128x64xbf16>, vector<64x64xbf16>, vector<128x64xf32> -> vector<128x64xf32>
    %51 = arith.addf %40, %50 : vector<128x64xf32>
    %c0_28 = arith.constant 0 : index
    %c0_29 = arith.constant 0 : index
    %c16 = arith.constant 16 : index
    %c0_30 = arith.constant 0 : index
    %52 = vector.load %arg3[%c0_28, %c0_29, %c16, %c0_30] : memref<1x1x162x64xbf16, #tpu.memory_space<vmem>>, vector<1x1x128x64xbf16>
    %53 = vector.shape_cast %52 : vector<1x1x128x64xbf16> to vector<128x64xbf16>
    %cst_31 = arith.constant 0.000000e+00 : f32
    %54 = arith.truncf %cst_31 : f32 to bf16
    %55 = vector.shape_cast %18 : vector<128x1xi1> to vector<128x1xi1>
    %56 = vector.broadcast %55 : vector<128x1xi1> to vector<128x64xi1>
    %57 = vector.broadcast %54 : bf16 to vector<128x64xbf16>
    %58 = arith.select %56, %53, %57 : vector<128x64xi1>, vector<128x64xbf16>
    %c3 = arith.constant 3 : index
    %c0_32 = arith.constant 0 : index
    %c0_33 = arith.constant 0 : index
    %59 = vector.load %arg4[%c3, %c0_32, %c0_33] : memref<9x64x64xbf16, #tpu.memory_space<vmem>>, vector<1x64x64xbf16>
    %60 = vector.shape_cast %59 : vector<1x64x64xbf16> to vector<64x64xbf16>
    %cst_34 = arith.constant dense<0.000000e+00> : vector<128x64xf32>
    %61 = tpu.matmul %58, %60, %cst_34 {dimension_numbers = #tpu.dot_dimension_numbers<[1], [0], [0], [1], [0, 0, 1, 1], [], []>} : vector<128x64xbf16>, vector<64x64xbf16>, vector<128x64xf32> -> vector<128x64xf32>
    %62 = arith.addf %51, %61 : vector<128x64xf32>
    %c0_35 = arith.constant 0 : index
    %c0_36 = arith.constant 0 : index
    %c17 = arith.constant 17 : index
    %c0_37 = arith.constant 0 : index
    %63 = vector.load %arg3[%c0_35, %c0_36, %c17, %c0_37] : memref<1x1x162x64xbf16, #tpu.memory_space<vmem>>, vector<1x1x128x64xbf16>
    %64 = vector.shape_cast %63 : vector<1x1x128x64xbf16> to vector<128x64xbf16>
    %c4 = arith.constant 4 : index
    %c0_38 = arith.constant 0 : index
    %c0_39 = arith.constant 0 : index
    %65 = vector.load %arg4[%c4, %c0_38, %c0_39] : memref<9x64x64xbf16, #tpu.memory_space<vmem>>, vector<1x64x64xbf16>
    %66 = vector.shape_cast %65 : vector<1x64x64xbf16> to vector<64x64xbf16>
    %cst_40 = arith.constant dense<0.000000e+00> : vector<128x64xf32>
    %67 = tpu.matmul %64, %66, %cst_40 {dimension_numbers = #tpu.dot_dimension_numbers<[1], [0], [0], [1], [0, 0, 1, 1], [], []>} : vector<128x64xbf16>, vector<64x64xbf16>, vector<128x64xf32> -> vector<128x64xf32>
    %68 = arith.addf %62, %67 : vector<128x64xf32>
    %c0_41 = arith.constant 0 : index
    %c0_42 = arith.constant 0 : index
    %c18 = arith.constant 18 : index
    %c0_43 = arith.constant 0 : index
    %69 = vector.load %arg3[%c0_41, %c0_42, %c18, %c0_43] : memref<1x1x162x64xbf16, #tpu.memory_space<vmem>>, vector<1x1x128x64xbf16>
    %70 = vector.shape_cast %69 : vector<1x1x128x64xbf16> to vector<128x64xbf16>
    %cst_44 = arith.constant 0.000000e+00 : f32
    %71 = arith.truncf %cst_44 : f32 to bf16
    %72 = vector.shape_cast %20 : vector<128x1xi1> to vector<128x1xi1>
    %73 = vector.broadcast %72 : vector<128x1xi1> to vector<128x64xi1>
    %74 = vector.broadcast %71 : bf16 to vector<128x64xbf16>
    %75 = arith.select %73, %70, %74 : vector<128x64xi1>, vector<128x64xbf16>
    %c5 = arith.constant 5 : index
    %c0_45 = arith.constant 0 : index
    %c0_46 = arith.constant 0 : index
    %76 = vector.load %arg4[%c5, %c0_45, %c0_46] : memref<9x64x64xbf16, #tpu.memory_space<vmem>>, vector<1x64x64xbf16>
    %77 = vector.shape_cast %76 : vector<1x64x64xbf16> to vector<64x64xbf16>
    %cst_47 = arith.constant dense<0.000000e+00> : vector<128x64xf32>
    %78 = tpu.matmul %75, %77, %cst_47 {dimension_numbers = #tpu.dot_dimension_numbers<[1], [0], [0], [1], [0, 0, 1, 1], [], []>} : vector<128x64xbf16>, vector<64x64xbf16>, vector<128x64xf32> -> vector<128x64xf32>
    %79 = arith.addf %68, %78 : vector<128x64xf32>
    %c0_48 = arith.constant 0 : index
    %c0_49 = arith.constant 0 : index
    %c32 = arith.constant 32 : index
    %c0_50 = arith.constant 0 : index
    %80 = vector.load %arg3[%c0_48, %c0_49, %c32, %c0_50] : memref<1x1x162x64xbf16, #tpu.memory_space<vmem>>, vector<1x1x128x64xbf16>
    %81 = vector.shape_cast %80 : vector<1x1x128x64xbf16> to vector<128x64xbf16>
    %cst_51 = arith.constant 0.000000e+00 : f32
    %82 = arith.truncf %cst_51 : f32 to bf16
    %83 = vector.shape_cast %18 : vector<128x1xi1> to vector<128x1xi1>
    %84 = vector.broadcast %83 : vector<128x1xi1> to vector<128x64xi1>
    %85 = vector.broadcast %82 : bf16 to vector<128x64xbf16>
    %86 = arith.select %84, %81, %85 : vector<128x64xi1>, vector<128x64xbf16>
    %c6 = arith.constant 6 : index
    %c0_52 = arith.constant 0 : index
    %c0_53 = arith.constant 0 : index
    %87 = vector.load %arg4[%c6, %c0_52, %c0_53] : memref<9x64x64xbf16, #tpu.memory_space<vmem>>, vector<1x64x64xbf16>
    %88 = vector.shape_cast %87 : vector<1x64x64xbf16> to vector<64x64xbf16>
    %cst_54 = arith.constant dense<0.000000e+00> : vector<128x64xf32>
    %89 = tpu.matmul %86, %88, %cst_54 {dimension_numbers = #tpu.dot_dimension_numbers<[1], [0], [0], [1], [0, 0, 1, 1], [], []>} : vector<128x64xbf16>, vector<64x64xbf16>, vector<128x64xf32> -> vector<128x64xf32>
    %90 = arith.addf %79, %89 : vector<128x64xf32>
    %c0_55 = arith.constant 0 : index
    %c0_56 = arith.constant 0 : index
    %c33 = arith.constant 33 : index
    %c0_57 = arith.constant 0 : index
    %91 = vector.load %arg3[%c0_55, %c0_56, %c33, %c0_57] : memref<1x1x162x64xbf16, #tpu.memory_space<vmem>>, vector<1x1x128x64xbf16>
    %92 = vector.shape_cast %91 : vector<1x1x128x64xbf16> to vector<128x64xbf16>
    %c7 = arith.constant 7 : index
    %c0_58 = arith.constant 0 : index
    %c0_59 = arith.constant 0 : index
    %93 = vector.load %arg4[%c7, %c0_58, %c0_59] : memref<9x64x64xbf16, #tpu.memory_space<vmem>>, vector<1x64x64xbf16>
    %94 = vector.shape_cast %93 : vector<1x64x64xbf16> to vector<64x64xbf16>
    %cst_60 = arith.constant dense<0.000000e+00> : vector<128x64xf32>
    %95 = tpu.matmul %92, %94, %cst_60 {dimension_numbers = #tpu.dot_dimension_numbers<[1], [0], [0], [1], [0, 0, 1, 1], [], []>} : vector<128x64xbf16>, vector<64x64xbf16>, vector<128x64xf32> -> vector<128x64xf32>
    %96 = arith.addf %90, %95 : vector<128x64xf32>
    %c0_61 = arith.constant 0 : index
    %c0_62 = arith.constant 0 : index
    %c34 = arith.constant 34 : index
    %c0_63 = arith.constant 0 : index
    %97 = vector.load %arg3[%c0_61, %c0_62, %c34, %c0_63] : memref<1x1x162x64xbf16, #tpu.memory_space<vmem>>, vector<1x1x128x64xbf16>
    %98 = vector.shape_cast %97 : vector<1x1x128x64xbf16> to vector<128x64xbf16>
    %cst_64 = arith.constant 0.000000e+00 : f32
    %99 = arith.truncf %cst_64 : f32 to bf16
    %100 = vector.shape_cast %20 : vector<128x1xi1> to vector<128x1xi1>
    %101 = vector.broadcast %100 : vector<128x1xi1> to vector<128x64xi1>
    %102 = vector.broadcast %99 : bf16 to vector<128x64xbf16>
    %103 = arith.select %101, %98, %102 : vector<128x64xi1>, vector<128x64xbf16>
    %c8 = arith.constant 8 : index
    %c0_65 = arith.constant 0 : index
    %c0_66 = arith.constant 0 : index
    %104 = vector.load %arg4[%c8, %c0_65, %c0_66] : memref<9x64x64xbf16, #tpu.memory_space<vmem>>, vector<1x64x64xbf16>
    %105 = vector.shape_cast %104 : vector<1x64x64xbf16> to vector<64x64xbf16>
    %cst_67 = arith.constant dense<0.000000e+00> : vector<128x64xf32>
    %106 = tpu.matmul %103, %105, %cst_67 {dimension_numbers = #tpu.dot_dimension_numbers<[1], [0], [0], [1], [0, 0, 1, 1], [], []>} : vector<128x64xbf16>, vector<64x64xbf16>, vector<128x64xf32> -> vector<128x64xf32>
    %107 = arith.addf %96, %106 : vector<128x64xf32>
    %c0_68 = arith.constant 0 : index
    %c0_69 = arith.constant 0 : index
    %c0_70 = arith.constant 0 : index
    %c0_71 = arith.constant 0 : index
    %108 = vector.load %arg6[%c0_68, %c0_69, %c0_70, %c0_71] : memref<1x1x128x64xbf16, #tpu.memory_space<vmem>>, vector<1x1x128x64xbf16>
    %109 = vector.shape_cast %108 : vector<1x1x128x64xbf16> to vector<128x64xbf16>
    %110 = arith.extf %109 : vector<128x64xbf16> to vector<128x64xf32>
    %111 = arith.addf %107, %110 : vector<128x64xf32>
    %cst_72 = arith.constant 0.000000e+00 : f32
    %112 = vector.broadcast %cst_72 : f32 to vector<128x64xf32>
    %113 = arith.maximumf %111, %112 : vector<128x64xf32>
    %114 = arith.truncf %113 : vector<128x64xf32> to vector<128x64xbf16>
    %c0_73 = arith.constant 0 : index
    %c0_74 = arith.constant 0 : index
    %c0_75 = arith.constant 0 : index
    %c0_76 = arith.constant 0 : index
    %115 = vector.load %arg7[%c0_73, %c0_74, %c0_75, %c0_76] : memref<1x1x128x64xbf16, #tpu.memory_space<vmem>>, vector<1x1x128x64xbf16>
    %116 = vector.shape_cast %115 : vector<1x1x128x64xbf16> to vector<128x64xbf16>
    %117 = vector.shape_cast %114 : vector<128x64xbf16> to vector<1x1x128x64xbf16>
    tpu.vector_store %arg7[%c0_73, %c0_74, %c0_75, %c0_76], %117 {strides = array<i32>} : memref<1x1x128x64xbf16, #tpu.memory_space<vmem>>, vector<1x1x128x64xbf16>,
    return
  }
  func.func @transform_0(%arg0: i32, %arg1: i32, %arg2: i32) -> (i32, i32, i32, i32) {
    %c0_i32 = arith.constant 0 : i32
    %c0_i32_0 = arith.constant 0 : i32
    %c0_i32_1 = arith.constant 0 : i32
    return %arg1, %arg2, %c0_i32, %c0_i32_0 : i32, i32, i32, i32
  }
  func.func @transform_1(%arg0: i32, %arg1: i32, %arg2: i32) -> (i32, i32, i32) {
    %c0_i32 = arith.constant 0 : i32
    %c0_i32_0 = arith.constant 0 : i32
    %c0_i32_1 = arith.constant 0 : i32
    return %c0_i32, %c0_i32_0, %arg0 : i32, i32, i32
  }
  func.func @transform_2(%arg0: i32, %arg1: i32, %arg2: i32) -> (i32, i32) {
    %c0_i32 = arith.constant 0 : i32
    %c0_i32_0 = arith.constant 0 : i32
    return %c0_i32, %arg0 : i32, i32
  }
  func.func @transform_3(%arg0: i32, %arg1: i32, %arg2: i32) -> (i32, i32, i32, i32) {
    %c0_i32 = arith.constant 0 : i32
    %c0_i32_0 = arith.constant 0 : i32
    return %arg1, %arg2, %c0_i32, %arg0 : i32, i32, i32, i32
  }
  func.func @transform_4(%arg0: i32, %arg1: i32, %arg2: i32) -> (i32, i32, i32, i32) {
    %c0_i32 = arith.constant 0 : i32
    %c0_i32_0 = arith.constant 0 : i32
    return %arg1, %arg2, %c0_i32, %arg0 : i32, i32, i32, i32
  }
}

</mosaic_0001>

<bundles_post_ra>
// kernel: tpu_custom_call.1
= control target key start
LH: loop header
LB: loop body
LE: loop exit
PB: predicated region body
PF: predicated region fallthrough
CT: control target
= control target key end

     0   :  { %s3624_s15 = smov 0   ;;  %s3626_s16 = smov 0   ;;  %s4855_s0 = inlined_call_operand.vmem [shape: bf16[2,1,162,64], index: 0, kind: input, shape index: {}]   ;;  %s4856_s1 = inlined_call_operand.vmem [shape: bf16[9,64,64], index: 1, kind: input, shape index: {}]   ;;  %s4857_s2 = inlined_call_operand.vmem [shape: f32[1,64], index: 2, kind: input, shape index: {}]   ;;  %s4858_s3 = inlined_call_operand.vmem [shape: bf16[2,1,128,64], index: 3, kind: input, shape index: {}]   ;;  %s4859_s4 = inlined_call_operand.vmem [shape: bf16[2,1,128,64], index: 4, kind: output, shape index: {}]  }
   0x1   :  { %s3628_s17 = smov 0  }
   0x2 LB: > { %s29_s18 = sadd.s32 1, %s3591_s16  ;;  %p3048_p0 = scmp.ge.s32.totalorder %s3595_s17, 1  ;;  %s3595_s17 = sphi %s3628_s17, %s14_s17   ;;  %s3591_s16 = sphi %s3626_s16, %s5082_s16   ;;  %s3587_s15 = sphi %s3624_s15, %s5081_s15  }
   0x3   : > { %p31_p1 = scmp.ge.s32.totalorder %s29_s18, 2  ;;  %p229_p2 = scmp.lt.s32.totalorder %s3595_s17, 3 }
   0x5   : > { %s5084_s18 = smov (%p31_p1, %s29_s18), 0  ;;  %p230_p3 = pnand %p3048_p0, %p229_p2 }
   0x7   : > { %233 = sbr.rel (%p230_p3) target bundleno = 453 (0x1c5), region = 36 }
   0xc   : > { %v3437_v0 = vld [vmem:[%s4856_s1 + $0x18] sm:$0xff]  ;;  %p285_p4 = scmp.lt.s32.totalorder %s3587_s15, 1  ;;  %v328_v1 = vlaneseq  ;;  %v3436_v2 = vld [vmem:[%s4856_s1 + $0x10] sm:$0xff]  ;;  %vm3597_vm0 = vmmov 1   ;;  %v3435_v12 = vld [vmem:[%s4856_s1 + $0x8] sm:$0xff]  ;;  %v4893_v23 = vmov 0 }
   0xd   : > { %3533 = vmatpush.bf16.msra.mxu1 %v3437_v0  ;;  %3534 = vmatpush.bf16.msra.mxu2 %v3437_v0  ;;  %vm3657_vm1 = vmpackc.low %vm3597_vm0, %vm3597_vm0  ;;  %v3434_v19 = vld [vmem:[%s4856_s1] sm:$0xff]  ;;  %v4895_v24 = vmov 0  ;;  %v4897_v31 = vmov 0  ;;  %v4899_v38 = vmov 0  ;;  %v3453_v43 = vld [vmem:[%s4856_s1 + $0x58] sm:$0xff]  ;;  %vm4868_vm10 = vcmask 523264  }
   0xe   : > { %s5086_s15 = smov (!%p285_p4, %s3587_s15), 1  ;;  %v3650_v3 = vshrl.u32 %v328_v1, 7  ;;  %3535 = vmatpush.bf16.msra.mxu3 %v3437_v0  ;;  %754 = vmatpush.bf16.msra.mxu0 %v3437_v0  ;;  %v3457_v46 = vld [vmem:[%s4856_s1 + $0x78] sm:$0xff]  ;;  %v3452_v56 = vld [vmem:[%s4856_s1 + $0x50] sm:$0xff]  ;;  %v4903_v0 = vmov 0 }
   0xf   : > { %s3545_s23 = smul.u32 84, %s5086_s15  ;;  %v3449_v55 = vld [vmem:[%s4856_s1 + $0x38] sm:$0xff]  ;;  %v3456_v59 = vld [vmem:[%s4856_s1 + $0x70] sm:$0xff] }
  0x10   : > { %v333_v4 = vadd.s32 32, %v3650_v3  ;;  %v337_v5 = vadd.s32 64, %v3650_v3  ;;  %v341_v6 = vadd.s32 96, %v3650_v3  ;;  %v349_v7 = vand.u32 15, %v3650_v3  ;;  %v3469_v57 = vld [vmem:[%s4856_s1 + $0x98] sm:$0xff]  ;;  %v3448_v63 = vld [vmem:[%s4856_s1 + $0x30] sm:$0xff] }
  0x11   : > { %v335_v9 = vadd.s32 48, %v3650_v3  ;;  %v3663_v10 = vadd.s32 80, %v3650_v3  ;;  %v3666_v11 = vadd.s32 112, %v3650_v3  ;;  %3536 = vmatpush.bf16.msra.mxu1 %v3436_v2  ;;  %3537 = vmatpush.bf16.msra.mxu2 %v3436_v2  ;;  %s3674_s28 = scalar_lea.vmem %s4855_s0, %s3545_s23  ;;  %v331_v52 = vadd.s32 16, %v3650_v3  ;;  %v3489_v51 = vld [vmem:[%s4856_s1 + $0xf8] sm:$0xff] }
  0x12   : > { %v377_v13 = vand.u32 15, %v333_v4  ;;  %v405_v14 = vand.u32 15, %v337_v5  ;;  %v433_v15 = vand.u32 15, %v341_v6  ;;  %vm537_vm2 = vcmp.ne.s32.totalorder %v349_v7, 0  ;;  %3538 = vmatpush.bf16.msra.mxu3 %v3436_v2  ;;  %755 = vmatpush.bf16.msra.mxu0 %v3436_v2  ;;  %v577_v16 = vld [vmem:[%s3674_s28 + $0x10] sm:$0xf] }
  0x13   : > { %v578_v17 = vld [vmem:[%s3674_s28 + $0x14] sm:$0xf]  ;;  %v581_v18 = vld [vmem:[%s3674_s28 + $0x20] sm:$0xf]  ;;  %v582_v21 = vld [vmem:[%s3674_s28 + $0x24] sm:$0xf] }
  0x14   : > { %vm541_vm3 = vcmp.ne.s32.totalorder %v377_v13, 0  ;;  %v642_v20 = vsel %vm3657_vm1, %v578_v17, 0  ;;  %vm545_vm4 = vcmp.ne.s32.totalorder %v405_v14, 0  ;;  %vm3685_vm5 = vcmp.ne.s32.totalorder %v433_v15, 0  ;;  %vm3689_vm6 = vmpackc.low %vm537_vm2, %vm537_vm2  ;;  %v585_v27 = vld [vmem:[%s3674_s28 + $0x30] sm:$0xf] }
  0x15   : > { %v4894_v23 = vsel %vm3689_vm6, 4294967295, %v4893_v23  ;;  %vm3693_vm7 = vmpackc.low %vm541_vm3, %vm541_vm3  ;;  %v682_v25 = vunpack.c.l.b16 %v642_v20  ;;  %v646_v26 = vsel %vm3657_vm1, %v582_v21, 0  ;;  %v586_v28 = vld [vmem:[%s3674_s28 + $0x34] sm:$0xf]  ;;  %v391_v29 = vand.u32 15, %v335_v9  ;;  %3539 = vmatpush.bf16.msra.mxu1 %v3435_v12  ;;  %3540 = vmatpush.bf16.msra.mxu2 %v3435_v12  ;;  %v3451_v6 = vld [vmem:[%s4856_s1 + $0x48] sm:$0xff] }
  0x16   : > { %v4896_v24 = vsel %vm3693_vm7, 4294967295, %v4895_v24  ;;  %v641_v30 = vsel %vm3693_vm7, %v577_v16, 0  ;;  %vm3703_vm8 = vmpackc.low %vm545_vm4, %vm545_vm4  ;;  %v686_v32 = vunpack.c.l.b16 %v646_v26  ;;  %v650_v33 = vsel %vm3657_vm1, %v586_v28, 0  ;;  %v573_v34 = vld [vmem:[%s3674_s28] sm:$0xf]  ;;  %3541 = vmatpush.bf16.msra.mxu3 %v3435_v12  ;;  %756 = vmatpush.bf16.msra.mxu0 %v3435_v12  ;;  %v3468_v9 = vld [vmem:[%s4856_s1 + $0x90] sm:$0xff] }
  0x17   : > { %v4898_v31 = vsel %vm3703_vm8, 4294967295, %v4897_v31  ;;  %v574_v35 = vld [vmem:[%s3674_s28 + $0x4] sm:$0xf]  ;;  %v681_v36 = vunpack.c.l.b16 %v641_v30  ;;  %v645_v37 = vsel %vm3703_vm8, %v581_v18, 0  ;;  %vm3716_vm9 = vmpackc.low %vm3685_vm5, %vm3685_vm5  ;;  %v690_v39 = vunpack.c.l.b16 %v650_v33  ;;  %v579_v60 = vld [vmem:[%s3674_s28 + $0x18] sm:$0xf] }
  0x18   : > { %v4900_v38 = vsel %vm3716_vm9, 4294967295, %v4899_v38  ;;  %v637_v40 = vsel %vm3689_vm6, %v573_v34, 0  ;;  %v685_v41 = vunpack.c.l.b16 %v645_v37  ;;  %v649_v42 = vsel %vm3716_vm9, %v585_v27, 0  ;;  %v580_v61 = vld [vmem:[%s3674_s28 + $0x1c] sm:$0xf]  ;;  %v3455_v20 = vld [vmem:[%s4856_s1 + $0x68] sm:$0xff] }
  0x19   : > { %v638_v44 = vsel %vm3657_vm1, %v574_v35, 0  ;;  %v677_v45 = vunpack.c.l.b16 %v637_v40  ;;  %v695_v47 = vpack.c.b16 %v682_v25, %v681_v36  ;;  %v689_v48 = vunpack.c.l.b16 %v649_v42  ;;  %3542 = vmatpush.bf16.msra.mxu1 %v3434_v19  ;;  %3543 = vmatpush.bf16.msra.mxu2 %v3434_v19  ;;  %v583_v1 = vld [vmem:[%s3674_s28 + $0x28] sm:$0xf]  ;;  %v584_v2 = vld [vmem:[%s3674_s28 + $0x2c] sm:$0xf]  ;;  %v3450_v37 = vld [vmem:[%s4856_s1 + $0x40] sm:$0xff] }
  0x1a   : > { %v678_v49 = vunpack.c.l.b16 %v638_v44  ;;  %v697_v50 = vpack.c.b16 %v686_v32, %v685_v41  ;;  %vm3732_vm11 = vcmp.ne.s32.totalorder %v391_v29, 0  ;;  %3544 = vmatpush.bf16.msra.mxu3 %v3434_v19  ;;  %757 = vmatpush.bf16.msra.mxu0 %v3434_v19  ;;  %v419_v58 = vand.u32 15, %v3663_v10  ;;  %v587_v5 = vld [vmem:[%s3674_s28 + $0x38] sm:$0xf]  ;;  %v576_v13 = vld [vmem:[%s3674_s28 + $0xc] sm:$0xf] }
  0x1b   : > { %v699_v53 = vpack.c.b16 %v690_v39, %v689_v48  ;;  %v447_v62 = vand.u32 15, %v3666_v11  ;;  %vm3761_vm12 = vmpackc.low %vm3732_vm11, %vm3732_vm11  ;;  %v4905_v4 = vmov 0  ;;  %v363_v7 = vand.u32 15, %v331_v52  ;;  %v588_v11 = vld [vmem:[%s3674_s28 + $0x3c] sm:$0xf]  ;;  %v3447_v33 = vld [vmem:[%s4856_s1 + $0x28] sm:$0xff] }
  0x1c   : > { %v693_v54 = vpack.c.b16 %v678_v49, %v677_v45  ;;  %3072 = vmatmul.msk.bf16.vlgmr.msra.gmra.mxu1 %vm4868_vm10, %v695_v47  ;;  %3074 = vmatmul.msk.bf16.vlgmr.msra.gmra.mxu2 %vm4868_vm10, %v697_v50  ;;  %v4904_v0 = vsel %vm3761_vm12, 4294967295, %v4903_v0  ;;  %vm547_vm13 = vcmp.ne.s32.totalorder %v419_v58, 0  ;;  %v330_v10 = vadd.s32 8, %v3650_v3  ;;  %v575_v19 = vld [vmem:[%s3674_s28 + $0x8] sm:$0xf]  ;;  %v3454_v39 = vld [vmem:[%s4856_s1 + $0x60] sm:$0xff] }
  0x1d   : > { %1439 = vmatpush.bf16.msrb.mxu2 %v3453_v43  ;;  %3076 = vmatmul.msk.bf16.vlgmr.msra.gmra.mxu3 %vm4868_vm10, %v699_v53  ;;  %vm3769_vm14 = vmpackc.low %vm547_vm13, %vm547_vm13  ;;  %vm551_vm15 = vcmp.ne.s32.totalorder %v447_v62, 0  ;;  %v4907_v12 = vmov 0  ;;  %v3598_v14 = vmov 0   ;;  %vm1131_vm2 = vcmask 1040384   ;;  %v3467_v40 = vld [vmem:[%s4856_s1 + $0x88] sm:$0xff]  ;;  %v3842_v44 = vld [vmem:[%s3674_s28] sm:$0xff] }
  0x1e   : > { %1633 = vmatpush.bf16.msrb.mxu3 %v3457_v46  ;;  %3070 = vmatmul.msk.bf16.vlgmr.msra.gmra.mxu0 %vm4868_vm10, %v693_v54  ;;  %v4906_v4 = vsel %vm3769_vm14, 4294967295, %v4905_v4  ;;  %vm3782_vm0 = vmpackc.low %vm551_vm15, %vm551_vm15  ;;  %v1115_v15 = vsel %vm3657_vm1, 65537, %v3598_v14  ;;  %v3791_v16 = vunpack.c.l.b16 %v3598_v14  ;;  %v643_v17 = vsel %vm3761_vm12, %v579_v60, 0  ;;  %v3477_v50 = vld [vmem:[%s4856_s1 + $0xd8] sm:$0xff]  ;;  %v3466_v58 = vld [vmem:[%s4856_s1 + $0x80] sm:$0xff] }
  0x1f   : > { %1005 = vmatpush.bf16.msrb.mxu1 %v3449_v55  ;;  %1883 = vmatpush.bf16.msrb.mxu0 %v3469_v57  ;;  %v4908_v12 = vsel %vm3782_vm0, 4294967295, %v4907_v12  ;;  %v644_v18 = vsel %vm3657_vm1, %v580_v61, 0  ;;  %vm539_vm3 = vcmp.ne.s32.totalorder %v363_v7, 0  ;;  %v3802_v21 = vunpack.c.h.b16 %v3598_v14  ;;  %v3446_v57 = vld [vmem:[%s4856_s1 + $0x20] sm:$0xff] }
  0x20   : > { %v647_v22 = vsel %vm3769_vm14, %v583_v1, 0  ;;  %v648_v25 = vsel %vm3657_vm1, %v584_v2, 0  ;;  %vm3808_vm4 = vmpackc.low %vm539_vm3, %vm539_vm3  ;;  %v4909_v26 = vmov 0  ;;  %v332_v27 = vadd.s32 24, %v3650_v3  ;;  %v1066_v1 = vld [vmem:[%s3674_s28] sm:$0xe] }
  0x21   : > { %1440 = vmatpush.bf16.msrb.mxu2 %v3452_v56  ;;  %v4910_v26 = vsel %vm3808_vm4, 4294967295, %v4909_v26  ;;  %v356_v28 = vand.u32 15, %v330_v10  ;;  %v651_v29 = vsel %vm3782_vm0, %v587_v5, 0  ;;  %v652_v30 = vsel %vm3657_vm1, %v588_v11, 0  ;;  %v3473_v5 = vld [vmem:[%s4856_s1 + $0xb8] sm:$0xff]  ;;  %v3900_v11 = vld [vmem:[%s3674_s28 + $0x8] sm:$0xff] }
  0x22   : > { %1634 = vmatpush.bf16.msrb.mxu3 %v3456_v59  ;;  %v640_v32 = vsel %vm3657_vm1, %v576_v13, 0  ;;  %vm1132_vm5 = vcmask 1044484   ;;  %v3822_v34 = vunpack.c.l.b16 %v643_v17  ;;  %v3824_v35 = vunpack.c.l.b16 %v644_v18 }
  0x23   : > { %1006 = vmatpush.bf16.msrb.mxu1 %v3448_v63  ;;  %v639_v36 = vsel %vm3808_vm4, %v575_v19, 0  ;;  %1884 = vmatpush.bf16.msrb.mxu0 %v3468_v9  ;;  %v370_v41 = vand.u32 15, %v332_v27  ;;  %v3837_v42 = vunpack.c.l.b16 %v647_v22  ;;  %v3839_v43 = vunpack.c.l.b16 %v648_v25  ;;  %vm3846_vm13 = vmor %vm1131_vm2, %vm1132_vm5  ;;  %v816_v22 = vld [vmem:[%s3674_s28 + $0x4] sm:$0xf] }
  0x24   : > { %vm554_vm11 = vcmp.ne.s32.totalorder %v356_v28, 15  ;;  %v3850_v46 = vrot.slane %v1115_v15, 7  ;;  %v3852_v47 = vunpack.c.l.b16 %v651_v29  ;;  %v3854_v48 = vunpack.c.l.b16 %v652_v30  ;;  %v818_v30 = vld [vmem:[%s3674_s28 + $0xc] sm:$0xf] }
  0x25   : > { %1441 = vmatpush.bf16.msrb.mxu2 %v3451_v6  ;;  %v3856_v49 = vunpack.c.l.b16 %v640_v32  ;;  %vm556_vm15 = vcmp.ne.s32.totalorder %v370_v41, 15  ;;  %vm1100_vm3 = vmpackc.low %vm554_vm11, %vm554_vm11  ;;  %v679_v52 = vunpack.c.l.b16 %v639_v36  ;;  %v696_v56 = vpack.c.b16 %v3824_v35, %v3822_v34  ;;  %v3493_v6 = vld [vmem:[%s4856_s1 + $0x118] sm:$0xff]  ;;  %v817_v34 = vld [vmem:[%s3674_s28 + $0x8] sm:$0xf] }
  0x26   : > { %1635 = vmatpush.bf16.msrb.mxu3 %v3455_v20  ;;  %vm1102_vm2 = vmpackc.low %vm556_vm15, %vm556_vm15  ;;  %v1116_v53 = vsel %vm1100_vm3, 65537, %v3598_v14  ;;  %v3866_v54 = vrot.slane %v3850_v46, 4  ;;  %v1181_v55 = vunpack.c.l.b16 %v3850_v46  ;;  %v1182_v61 = vunpack.c.h.b16 %v3850_v46  ;;  %v3913_v20 = vld [vmem:[%s3674_s28 + $0x8] sm:$0xff]  ;;  %v4449_v35 = vld [vmem:[%s3674_s28 + $0x18] sm:$0xff] }
  0x27   : > { %1007 = vmatpush.bf16.msrb.mxu1 %v3447_v33  ;;  %1885 = vmatpush.bf16.msrb.mxu0 %v3467_v40  ;;  %v3878_v59 = vsel %vm1102_vm2, 65537, %v3598_v14  ;;  %v1136_v60 = vrot.slane %v1116_v53, 7  ;;  %v698_v62 = vpack.c.b16 %v3839_v43, %v3837_v42  ;;  %v888_v63 = vshll.u32 %v3842_v44, 16  ;;  %v1500_v36 = vld [vmem:[%s3674_s28 + $0x8] sm:$0xf]  ;;  %v3947_v43 = vld [vmem:[%s3674_s28 + $0x10] sm:$0xff] }
  0x28   : > { %v1142_v2 = vrot.slane %v3878_v59, 7  ;;  %vm1185_vm5 = vcmp.ne.s32.totalorder %v1181_v55, %v3791_v16  ;;  %v700_v7 = vpack.c.b16 %v3854_v48, %v3852_v47  ;;  %vm1186_vm11 = vcmp.ne.s32.totalorder %v1182_v61, %v3802_v21  ;;  %v1501_v42 = vld [vmem:[%s3674_s28 + $0xc] sm:$0xf] }
  0x29   : > { %1442 = vmatpush.bf16.msrb.mxu2 %v3450_v37  ;;  %v1137_v9 = vsel %vm3846_vm13, %v3866_v54, %v1136_v60  ;;  %v1138_v10 = vrot.slane %v1136_v60, 4  ;;  %v694_v13 = vpack.c.b16 %v3856_v49, %v679_v52  ;;  %vm3908_vm15 = vmpackc.low %vm1186_vm11, %vm1185_vm5  ;;  %v4913_v17 = vmov 0 }
  0x2a   : > { %1636 = vmatpush.bf16.msrb.mxu3 %v3454_v39  ;;  %v1143_v15 = vsel %vm3846_vm13, %v3866_v54, %v1142_v2  ;;  %v4914_v17 = vsel %vm3908_vm15, 4294967295, %v4913_v17  ;;  %v1188_v18 = vunpack.c.l.b16 %v1137_v9  ;;  %v1189_v19 = vunpack.c.h.b16 %v1137_v9 }
  0x2b   : > { %1008 = vmatpush.bf16.msrb.mxu1 %v3446_v57  ;;  %1886 = vmatpush.bf16.msrb.mxu0 %v3466_v58  ;;  %v1140_v25 = vsel %vm3846_vm13, %v1138_v10, %v3850_v46  ;;  %v1202_v27 = vunpack.c.l.b16 %v1143_v15  ;;  %v1203_v28 = vunpack.c.h.b16 %v1143_v15  ;;  %v1300_v29 = vsel %vm3908_vm15, %v1066_v1, 0 }
  0x2c   : > { %vm1192_vm3 = vcmp.ne.s32.totalorder %v1188_v18, %v3791_v16  ;;  %vm1193_vm2 = vcmp.ne.s32.totalorder %v1189_v19, %v3802_v21  ;;  %v1195_v32 = vunpack.c.l.b16 %v1140_v25  ;;  %v1196_v33 = vunpack.c.h.b16 %v1140_v25  ;;  %3073 = vmatmul.msk.bf16.gmra.mxu1 %vm4868_vm10, %v696_v56  ;;  %3075 = vmatmul.msk.bf16.gmra.mxu2 %vm4868_vm10, %v698_v62 }
  0x2d   : > { %2277 = vmatpush.bf16.msra.mxu2 %v3477_v50  ;;  %vm3927_vm5 = vmpackc.low %vm1193_vm2, %vm1192_vm3  ;;  %vm1206_vm11 = vcmp.ne.s32.totalorder %v1202_v27, %v3791_v16  ;;  %vm1207_vm15 = vcmp.ne.s32.totalorder %v1203_v28, %v3802_v21  ;;  %v1766_v37 = vshll.u32 %v3900_v11, 16  ;;  %3077 = vmatmul.msk.bf16.gmra.mxu3 %vm4868_vm10, %v700_v7  ;;  %v4917_v39 = vmov 0  ;;  %v819_v27 = vld [vmem:[%s3674_s28 + $0x10] sm:$0xf] }
  0x2e   : > { %2527 = vmatpush.bf16.msra.mxu3 %v3489_v51  ;;  %3071 = vmatmul.msk.bf16.gmra.mxu0 %vm4868_vm10, %v694_v13  ;;  %vm1199_vm0 = vcmp.ne.s32.totalorder %v1195_v32, %v3791_v16  ;;  %vm1200_vm9 = vcmp.ne.s32.totalorder %v1196_v33, %v3802_v21  ;;  %vm3939_vm14 = vmpackc.low %vm1207_vm15, %vm1206_vm11  ;;  %v1301_v40 = vsel %vm3927_vm5, %v816_v22, 0  ;;  %v1343_v41 = vunpack.c.l.b16 %v1300_v29 }
  0x2f   : > { %2083 = vmatpush.bf16.msra.mxu1 %v3473_v5  ;;  %2727 = vmatpush.bf16.msra.mxu0 %v3493_v6  ;;  %v4918_v39 = vsel %vm3939_vm14, 4294967295, %v4917_v39  ;;  %v886_v47 = vshrl.u32 %v3842_v44, 16  ;;  %v893_v48 = vshll.u32 %v3913_v20, 16  ;;  %vm3951_vm3 = vmpackc.low %vm1200_vm9, %vm1199_vm0  ;;  %v1303_v50 = vsel %vm3939_vm14, %v818_v30, 0 }
  0x30   : > { %v1344_v51 = vunpack.c.l.b16 %v1301_v40  ;;  %v890_v52 = vrot.slane %v888_v63, 1  ;;  %v1302_v53 = vsel %vm3951_vm3, %v817_v34, 0  ;;  %v1346_v55 = vunpack.c.l.b16 %v1303_v50  ;;  %v820_v50 = vld [vmem:[%s3674_s28 + $0x14] sm:$0xf] }
  0x31   : > { %v1516_v56 = vsel %vm3689_vm6, %v1500_v36, 0  ;;  %v1345_v57 = vunpack.c.l.b16 %v1302_v53  ;;  %v1517_v44 = vsel %vm3657_vm1, %v1501_v42, 0  ;;  %v1764_v58 = vshrl.u32 %v3900_v11, 16  ;;  %v4007_v53 = vld [vmem:[%s3674_s28 + $0x18] sm:$0xff] }
  0x32   : > { %v334_v60 = vadd.s32 40, %v3650_v3  ;;  %v1360_v61 = vpack.c.b16 %v1344_v51, %v1343_v41  ;;  %v1768_v62 = vrot.slane %v1766_v37, 1  ;;  %v1771_v1 = vshll.u32 %v3947_v43, 16  ;;  %v4001_v51 = vld [vmem:[%s3674_s28 + $0x10] sm:$0xff] }
  0x33   : > { %v1144_v63 = vrot.slane %v1142_v2, 4  ;;  %v1361_v5 = vpack.c.b16 %v1346_v55, %v1345_v57  ;;  %v891_v7 = vor.u32 %v890_v52, %v886_v47  ;;  %v3968_v9 = vrot.slane %v893_v48, 1  ;;  %v1502_v52 = vld [vmem:[%s3674_s28 + $0x10] sm:$0xf] }
  0x34   : > { %v384_v6 = vand.u32 15, %v334_v60  ;;  %v1557_v10 = vunpack.c.l.b16 %v1516_v56  ;;  %v1558_v13 = vunpack.c.l.b16 %v1517_v44  ;;  %v1370_v19 = vrot.slane %v1360_v61, 1  ;;  %v3488_v60 = vld [vmem:[%s4856_s1 + $0xf0] sm:$0xff] }
  0x35   : > { %v1146_v11 = vsel %vm3846_vm13, %v1144_v63, %v3850_v46  ;;  %v3973_v22 = vrot.slane %v1361_v5, 1  ;;  %v1769_v59 = vor.u32 %v1768_v62, %v1764_v58  ;;  %v3975_v2 = vrot.slane %v1771_v1, 1  ;;  %v3476_v58 = vld [vmem:[%s4856_s1 + $0xd0] sm:$0xff]  ;;  %2528 = vmatpush.bf16.msra.mxu3 %v3488_v60 }
  0x36   : > { %vm558_vm0 = vcmp.ne.s32.totalorder %v384_v6, 15  ;;  %v1209_v15 = vunpack.c.l.b16 %v1146_v11  ;;  %v1210_v18 = vunpack.c.h.b16 %v1146_v11  ;;  %vm4870_vm2 = vcmask 1046528   ;;  %v3472_v62 = vld [vmem:[%s4856_s1 + $0xb0] sm:$0xff]  ;;  %2278 = vmatpush.bf16.msra.mxu2 %v3476_v58 }
  0x37   : > { %vm1104_vm15 = vmpackc.low %vm558_vm0, %vm558_vm0  ;;  %v4921_v29 = vmov 0  ;;  %vm4923_vm6 = vsmask.f32 7424  ;;  %v1573_v32 = vpack.c.b16 %v1558_v13, %v1557_v10  ;;  %v336_v33 = vadd.s32 56, %v3650_v3  ;;  %v3492_v1 = vld [vmem:[%s4856_s1 + $0x110] sm:$0xff]  ;;  %2084 = vmatpush.bf16.msra.mxu1 %v3472_v62 }
  0x38   : > { %v1120_v25 = vsel %vm1104_vm15, 65537, %v3598_v14  ;;  %vm1213_vm11 = vcmp.ne.s32.totalorder %v1209_v15, %v3791_v16  ;;  %vm1214_vm10 = vcmp.ne.s32.totalorder %v1210_v18, %v3802_v21  ;;  %v896_v30 = vsel %vm4923_vm6, %v891_v7, %v3968_v9  ;;  %vm4924_vm0 = vmmov %vm4923_vm6  ;;  %v1503_v6 = vld [vmem:[%s3674_s28 + $0x14] sm:$0xf]  ;;  %2728 = vmatpush.bf16.msra.mxu0 %v3492_v1 }
  0x39   : > { %v1148_v28 = vrot.slane %v1120_v25, 7  ;;  %vm3981_vm9 = vmpackc.low %vm1214_vm10, %vm1213_vm11  ;;  %v1372_v34 = vsel %vm4870_vm2, %v1370_v19, %v3973_v22  ;;  %v1774_v36 = vsel %vm4924_vm0, %v1769_v59, %v3975_v2  ;;  %v398_v48 = vand.u32 15, %v336_v33 }
  0x3a   : > { %v4922_v29 = vsel %vm3981_vm9, 4294967295, %v4921_v29  ;;  %v1304_v47 = vsel %vm3981_vm9, %v819_v27, 0  ;;  %vm4925_vm6 = vcmask 523264   ;;  %v4930_v57 = vmov 0 }
  0x3b   : > { %v1149_v37 = vsel %vm3846_vm13, %v3866_v54, %v1148_v28  ;;  %v1150_v40 = vrot.slane %v1148_v28, 4  ;;  %vm4926_vm10 = vmmov %vm4925_vm6  ;;  %vm4009_vm0 = vcmp.ne.s32.totalorder %v398_v48, 15  ;;  %v1347_v44 = vunpack.c.l.b16 %v1304_v47 }
  0x3c   : > { %v1216_v41 = vunpack.c.l.b16 %v1149_v37  ;;  %v1217_v42 = vunpack.c.h.b16 %v1149_v37  ;;  %3134 = vmatmul.msk.bf16.vlgmr.msrb.gmra.mxu1 %vm4925_vm6, %v896_v30  ;;  %3166 = vmatmul.msk.bf16.vlgmr.msrb.gmra.mxu2 %vm4926_vm10, %v1372_v34  ;;  %vm4929_vm10 = vmmov %vm4925_vm6  ;;  %v338_v63 = vadd.s32 72, %v3650_v3  ;;  %v897_v13 = vshrl.u32 %v3913_v20, 16 }
  0x3d   : > { %v1152_v56 = vsel %vm3846_vm13, %v1150_v40, %v3850_v46  ;;  %3198 = vmatmul.msk.bf16.vlgmr.msrb.gmra.mxu3 %vm4925_vm6, %v1573_v32  ;;  %vm1106_vm6 = vmpackc.low %vm4009_vm0, %vm4009_vm0  ;;  %v901_v15 = vshll.u32 %v4001_v51, 16  ;;  %v1518_v59 = vsel %vm3808_vm4, %v1502_v52, 0  ;;  %v1519_v27 = vsel %vm3657_vm1, %v1503_v6, 0  ;;  %v822_v52 = vld [vmem:[%s3674_s28 + $0x1c] sm:$0xf] }
  0x3e   : > { %vm1220_vm15 = vcmp.ne.s32.totalorder %v1216_v41, %v3791_v16  ;;  %vm1221_vm11 = vcmp.ne.s32.totalorder %v1217_v42, %v3802_v21  ;;  %3262 = vmatmul.msk.bf16.vlgmr.msrb.gmra.mxu0 %vm4929_vm10, %v1774_v36  ;;  %v1122_v7 = vsel %vm1106_vm6, 65537, %v3598_v14  ;;  %v1223_v10 = vunpack.c.l.b16 %v1152_v56  ;;  %v4096_v6 = vld [vmem:[%s3674_s28 + $0x18] sm:$0xff] }
  0x3f   : > { %vm4018_vm2 = vmpackc.low %vm1221_vm11, %vm1220_vm15  ;;  %v1224_v11 = vunpack.c.h.b16 %v1152_v56  ;;  %v1154_v18 = vrot.slane %v1122_v7, 7  ;;  %v412_v25 = vand.u32 15, %v338_v63  ;;  %v1775_v28 = vshrl.u32 %v3947_v43, 16 }
  0x40   : > { %v4931_v57 = vsel %vm4018_vm2, 4294967295, %v4930_v57  ;;  %v1305_v61 = vsel %vm4018_vm2, %v820_v50, 0  ;;  %v1779_v30 = vshll.u32 %v4007_v53, 16  ;;  %vm4054_vm15 = vcmp.ne.s32.totalorder %v1223_v10, %v3791_v16  ;;  %v821_v50 = vld [vmem:[%s3674_s28 + $0x18] sm:$0xf] }
  0x41   : > { %v1348_v5 = vunpack.c.l.b16 %v1305_v61  ;;  %v1155_v20 = vsel %vm3846_vm13, %v3866_v54, %v1154_v18  ;;  %vm1228_vm11 = vcmp.ne.s32.totalorder %v1224_v11, %v3802_v21  ;;  %v899_v36 = vor.u32 %v897_v13, %v3968_v9  ;;  %v4102_v13 = vld [vmem:[%s3674_s28 + $0x20] sm:$0xff] }
  0x42   : > { %v1230_v33 = vunpack.c.l.b16 %v1155_v20  ;;  %v1231_v34 = vunpack.c.h.b16 %v1155_v20  ;;  %v903_v43 = vrot.slane %v901_v15, 1  ;;  %v1559_v37 = vunpack.c.l.b16 %v1518_v59  ;;  %vm4067_vm2 = vmpackc.low %vm1228_vm11, %vm4054_vm15  ;;  %v1504_v15 = vld [vmem:[%s3674_s28 + $0x18] sm:$0xf] }
  0x43   : > { %v1362_v19 = vpack.c.b16 %v1348_v5, %v1347_v44  ;;  %vm562_vm0 = vcmp.ne.s32.totalorder %v412_v25, 15  ;;  %v1560_v41 = vunpack.c.l.b16 %v1519_v27  ;;  %v1777_v42 = vor.u32 %v1775_v28, %v3975_v2 }
  0x44   : > { %vm1234_vm10 = vcmp.ne.s32.totalorder %v1230_v33, %v3791_v16  ;;  %vm1235_vm6 = vcmp.ne.s32.totalorder %v1231_v34, %v3802_v21  ;;  %vm1108_vm4 = vmpackc.low %vm562_vm0, %vm562_vm0  ;;  %v1781_v47 = vrot.slane %v1779_v30, 1  ;;  %vm4938_vm14 = vsmask.f32 7424  ;;  %v3491_v30 = vld [vmem:[%s4856_s1 + $0x108] sm:$0xff] }
  0x45   : > { %v4060_v40 = vrot.slane %v1362_v19, 1  ;;  %v1124_v9 = vsel %vm1108_vm4, 65537, %v3598_v14  ;;  %vm4074_vm9 = vmpackc.low %vm1235_vm6, %vm1234_vm10  ;;  %v904_v56 = vsel %vm4938_vm14, %v899_v36, %v903_v43  ;;  %v1156_v44 = vrot.slane %v1154_v18, 4  ;;  %v1505_v18 = vld [vmem:[%s3674_s28 + $0x1c] sm:$0xf]  ;;  %2729 = vmatpush.bf16.msra.mxu0 %v3491_v30 }
  0x46   : > { %vm4939_vm0 = vcmask 1046528   ;;  %v1574_v58 = vpack.c.b16 %v1560_v41, %v1559_v37  ;;  %v1160_v60 = vrot.slane %v1124_v9, 7  ;;  %v340_v61 = vadd.s32 88, %v3650_v3  ;;  %vm4940_vm4 = vmmov %vm4938_vm14 }
  0x47   : > { %v1374_v2 = vsel %vm4939_vm0, %v3973_v22, %v4060_v40  ;;  %v1782_v62 = vsel %vm4940_vm4, %v1777_v42, %v1781_v47  ;;  %v1306_v1 = vsel %vm4067_vm2, %v821_v50, 0  ;;  %v1307_v63 = vsel %vm4074_vm9, %v822_v52, 0 }
  0x48   : > { %vm4941_vm14 = vcmask 523264   ;;  %v1158_v22 = vsel %vm3846_vm13, %v1156_v44, %v3850_v46  ;;  %v426_v5 = vand.u32 15, %v340_v61  ;;  %v1349_v7 = vunpack.c.l.b16 %v1306_v1 }
  0x49   : > { %vm4942_vm15 = vmmov %vm4941_vm14  ;;  %v1350_v10 = vunpack.c.l.b16 %v1307_v63  ;;  %v1161_v11 = vsel %vm3846_vm13, %v3866_v54, %v1160_v60  ;;  %v1237_v19 = vunpack.c.l.b16 %v1158_v22  ;;  %v1238_v59 = vunpack.c.h.b16 %v1158_v22 }
  0x4a   : > { %vm4943_vm11 = vmmov %vm4941_vm14  ;;  %v905_v25 = vshrl.u32 %v4001_v51, 16  ;;  %v1244_v27 = vunpack.c.l.b16 %v1161_v11  ;;  %v1245_v28 = vunpack.c.h.b16 %v1161_v11  ;;  %vm4107_vm6 = vcmp.ne.s32.totalorder %v426_v5, 15 }
  0x4b   : > { %vm4944_vm10 = vmmov %vm4943_vm11  ;;  %v909_v20 = vshll.u32 %v4096_v6, 16  ;;  %v1363_v32 = vpack.c.b16 %v1350_v10, %v1349_v7  ;;  %v1520_v33 = vsel %vm3693_vm7, %v1504_v15, 0  ;;  %v1521_v34 = vsel %vm3657_vm1, %v1505_v18, 0  ;;  %v4154_v10 = vld [vmem:[%s3674_s28 + $0x20] sm:$0xff] }
  0x4c   : > { %3135 = vmatmul.msk.bf16.gmra.mxu1 %vm4941_vm14, %v904_v56  ;;  %3167 = vmatmul.msk.bf16.gmra.mxu2 %vm4942_vm15, %v1374_v2  ;;  %v1783_v36 = vshrl.u32 %v4007_v53, 16  ;;  %v1787_v51 = vshll.u32 %v4102_v13, 16  ;;  %vm1241_vm0 = vcmp.ne.s32.totalorder %v1237_v19, %v3791_v16  ;;  %vm1242_vm4 = vcmp.ne.s32.totalorder %v1238_v59, %v3802_v21  ;;  %vm1110_vm14 = vmpackc.low %vm4107_vm6, %vm4107_vm6  ;;  %v824_v2 = vld [vmem:[%s3674_s28 + $0x24] sm:$0xf]  ;;  %v3475_v59 = vld [vmem:[%s4856_s1 + $0xc8] sm:$0xff] }
  0x4d   : > { %3199 = vmatmul.msk.bf16.gmra.mxu3 %vm4943_vm11, %v1574_v58  ;;  %v907_v37 = vor.u32 %v905_v25, %v903_v43  ;;  %vm1248_vm15 = vcmp.ne.s32.totalorder %v1244_v27, %v3791_v16  ;;  %vm1249_vm11 = vcmp.ne.s32.totalorder %v1245_v28, %v3802_v21  ;;  %v911_v41 = vrot.slane %v909_v20, 1  ;;  %v823_v43 = vld [vmem:[%s3674_s28 + $0x20] sm:$0xf]  ;;  %v3487_v25 = vld [vmem:[%s4856_s1 + $0xe8] sm:$0xff]  ;;  %2279 = vmatpush.bf16.msra.mxu2 %v3475_v59 }
  0x4e   : > { %3263 = vmatmul.msk.bf16.gmra.mxu0 %vm4944_vm10, %v1782_v62  ;;  %v4125_v42 = vrot.slane %v1363_v32, 1  ;;  %v1561_v53 = vunpack.c.l.b16 %v1520_v33  ;;  %v1562_v9 = vunpack.c.l.b16 %v1521_v34  ;;  %v1785_v50 = vor.u32 %v1783_v36, %v1781_v47  ;;  %vm4127_vm10 = vmpackc.low %vm1242_vm4, %vm1241_vm0  ;;  %v3471_v27 = vld [vmem:[%s4856_s1 + $0xa8] sm:$0xff]  ;;  %v1506_v20 = vld [vmem:[%s3674_s28 + $0x20] sm:$0xf]  ;;  %2529 = vmatpush.bf16.msra.mxu3 %v3487_v25 }
  0x4f   : > { %v1789_v52 = vrot.slane %v1787_v51, 1  ;;  %v4132_v44 = vsel %vm1110_vm14, 65537, %v3598_v14  ;;  %vm4136_vm6 = vmpackc.low %vm1249_vm11, %vm1248_vm15  ;;  %v4949_v58 = vmov 0  ;;  %v1162_v61 = vrot.slane %v1160_v60, 4  ;;  %v4174_v28 = vld [vmem:[%s3674_s28 + $0x28] sm:$0xff]  ;;  %2085 = vmatpush.bf16.msra.mxu1 %v3471_v27 }
  0x50   : > { %v4950_v58 = vsel %vm4136_vm6, 4294967295, %v4949_v58  ;;  %v342_v62 = vadd.s32 104, %v3650_v3  ;;  %vm4951_vm7 = vsmask.f32 7424  ;;  %vm4952_vm0 = vcmask 1046528  }
  0x51   : > { %v912_v47 = vsel %vm4951_vm7, %v907_v37, %v911_v41  ;;  %v1376_v1 = vsel %vm4952_vm0, %v4060_v40, %v4125_v42  ;;  %v1575_v63 = vpack.c.b16 %v1562_v9, %v1561_v53  ;;  %v1166_v22 = vrot.slane %v4132_v44, 7  ;;  %vm4953_vm4 = vmmov %vm4951_vm7  ;;  %v1507_v32 = vld [vmem:[%s3674_s28 + $0x24] sm:$0xf] }
  0x52   : > { %v1790_v5 = vsel %vm4953_vm4, %v1785_v50, %v1789_v52  ;;  %v1308_v7 = vsel %vm4127_vm10, %v823_v43, 0  ;;  %v1309_v60 = vsel %vm4136_vm6, %v824_v2, 0  ;;  %vm4954_vm14 = vcmask 523264  }
  0x53   : > { %vm4955_vm7 = vmmov %vm4954_vm14  ;;  %v1164_v40 = vsel %vm3846_vm13, %v1162_v61, %v3850_v46  ;;  %v440_v11 = vand.u32 15, %v342_v62  ;;  %v1351_v15 = vunpack.c.l.b16 %v1308_v7  ;;  %v1352_v18 = vunpack.c.l.b16 %v1309_v60 }
  0x54   : > { %vm4956_vm15 = vmmov %vm4955_vm7  ;;  %v1167_v19 = vsel %vm3846_vm13, %v3866_v54, %v1166_v22  ;;  %v1251_v33 = vunpack.c.l.b16 %v1164_v40  ;;  %v1252_v34 = vunpack.c.h.b16 %v1164_v40  ;;  %v913_v36 = vshrl.u32 %v4096_v6, 16  ;;  %v825_v40 = vld [vmem:[%s3674_s28 + $0x28] sm:$0xf] }
  0x55   : > { %vm4957_vm11 = vmmov %vm4955_vm7  ;;  %v1258_v51 = vunpack.c.l.b16 %v1167_v19  ;;  %v1259_v37 = vunpack.c.h.b16 %v1167_v19  ;;  %vm4182_vm0 = vcmp.ne.s32.totalorder %v440_v11, 15  ;;  %v917_v9 = vshll.u32 %v4154_v10, 16  ;;  %v826_v11 = vld [vmem:[%s3674_s28 + $0x2c] sm:$0xf] }
  0x56   : > { %v1364_v50 = vpack.c.b16 %v1352_v18, %v1351_v15  ;;  %v1522_v44 = vsel %vm3761_vm12, %v1506_v20, 0  ;;  %v1523_v43 = vsel %vm3657_vm1, %v1507_v32, 0  ;;  %v1791_v2 = vshrl.u32 %v4102_v13, 16  ;;  %v4231_v20 = vld [vmem:[%s3674_s28 + $0x28] sm:$0xff] }
  0x57   : > { %v1795_v6 = vshll.u32 %v4174_v28, 16  ;;  %vm1255_vm4 = vcmp.ne.s32.totalorder %v1251_v33, %v3791_v16  ;;  %v915_v61 = vor.u32 %v913_v36, %v911_v41  ;;  %v919_v62 = vrot.slane %v917_v9, 1  ;;  %v4237_v36 = vld [vmem:[%s3674_s28 + $0x30] sm:$0xff] }
  0x58   : > { %v1563_v13 = vunpack.c.l.b16 %v1522_v44  ;;  %v4960_v7 = vmov 0  ;;  %v4962_v41 = vmov 0  ;;  %v1168_v15 = vrot.slane %v1166_v22, 4 }
  0x59   : > { %v344_v18 = vadd.s32 120, %v3650_v3  ;;  %vm4964_vm6 = vsmask.f32 7424 }
  0x5a   : > { %v920_v19 = vsel %vm4964_vm6, %v915_v61, %v919_v62  ;;  %v1170_v3 = vsel %vm3846_vm13, %v1168_v15, %v3850_v46 }
  0x5b   : > { %v1265_v53 = vunpack.c.l.b16 %v1170_v3  ;;  %v1266_v9 = vunpack.c.h.b16 %v1170_v3 }
  0x5c   : > { %3136 = vmatmul.msk.bf16.gmra.mxu1 %vm4954_vm14, %v912_v47  ;;  %3168 = vmatmul.msk.bf16.gmra.mxu2 %vm4955_vm7, %v1376_v1  ;;  %vm1256_vm14 = vcmp.ne.s32.totalorder %v1252_v34, %v3802_v21  ;;  %vm1112_vm7 = vmpackc.low %vm4182_vm0, %vm4182_vm0  ;;  %v4200_v47 = vrot.slane %v1364_v50, 1  ;;  %v1564_v1 = vunpack.c.l.b16 %v1523_v43  ;;  %v921_v50 = vshrl.u32 %v4154_v10, 16 }
  0x5d   : > { %3200 = vmatmul.msk.bf16.gmra.mxu3 %vm4956_vm15, %v1575_v63  ;;  %vm1262_vm15 = vcmp.ne.s32.totalorder %v1258_v51, %v3791_v16  ;;  %v1793_v63 = vor.u32 %v1791_v2, %v1789_v52  ;;  %vm4202_vm12 = vmpackc.low %vm1256_vm14, %vm1255_vm4  ;;  %v1128_v60 = vsel %vm1112_vm7, 65537, %v3598_v14  ;;  %vm4965_vm4 = vcmask 1046528   ;;  %v1508_v51 = vld [vmem:[%s3674_s28 + $0x28] sm:$0xf] }
  0x5e   : > { %3264 = vmatmul.msk.bf16.gmra.mxu0 %vm4957_vm11, %v1790_v5  ;;  %vm1263_vm11 = vcmp.ne.s32.totalorder %v1259_v37, %v3802_v21  ;;  %v1797_v5 = vrot.slane %v1795_v6, 1  ;;  %v4961_v7 = vsel %vm4202_vm12, 4294967295, %v4960_v7  ;;  %v1378_v52 = vsel %vm4965_vm4, %v4125_v42, %v4200_v47  ;;  %vm4966_vm14 = vmmov %vm4964_vm6  ;;  %v1509_v37 = vld [vmem:[%s3674_s28 + $0x2c] sm:$0xf] }
  0x5f   : > { %vm4209_vm0 = vmpackc.low %vm1263_vm11, %vm1262_vm15  ;;  %v1576_v59 = vpack.c.b16 %v1564_v1, %v1563_v13  ;;  %v1172_v25 = vrot.slane %v1128_v60, 7  ;;  %v1310_v30 = vsel %vm4202_vm12, %v825_v40, 0  ;;  %vm4967_vm7 = vcmask 523264  }
  0x60   : > { %v4963_v41 = vsel %vm4209_vm0, 4294967295, %v4962_v41  ;;  %v1798_v27 = vsel %vm4966_vm14, %v1793_v63, %v1797_v5  ;;  %v1311_v22 = vsel %vm4209_vm0, %v826_v11, 0  ;;  %vm4968_vm6 = vmmov %vm4967_vm7  ;;  %v454_v42 = vand.u32 15, %v344_v18 }
  0x61   : > { %vm4969_vm15 = vmmov %vm4968_vm6  ;;  %v1353_v32 = vunpack.c.l.b16 %v1310_v30  ;;  %v1354_v33 = vunpack.c.l.b16 %v1311_v22  ;;  %v1173_v34 = vsel %vm3846_vm13, %v3866_v54, %v1172_v25  ;;  %v925_v6 = vshll.u32 %v4231_v20, 16 }
  0x62   : > { %vm4970_vm11 = vmmov %vm4968_vm6  ;;  %v1272_v44 = vunpack.c.l.b16 %v1173_v34  ;;  %v1273_v43 = vunpack.c.h.b16 %v1173_v34  ;;  %vm4242_vm4 = vcmp.ne.s32.totalorder %v454_v42, 15  ;;  %v1524_v13 = vsel %vm3703_vm8, %v1508_v51, 0  ;;  %v4293_v34 = vld [vmem:[%s3674_s28 + $0x30] sm:$0xff] }
  0x63   : > { %v1365_v61 = vpack.c.b16 %v1354_v33, %v1353_v32  ;;  %v1525_v1 = vsel %vm3657_vm1, %v1509_v37, 0  ;;  %v1799_v63 = vshrl.u32 %v4174_v28, 16  ;;  %v1803_v10 = vshll.u32 %v4237_v36, 16 }
  0x64   : > { %vm1269_vm14 = vcmp.ne.s32.totalorder %v1265_v53, %v3791_v16  ;;  %v923_v60 = vor.u32 %v921_v50, %v919_v62  ;;  %v927_v40 = vrot.slane %v925_v6, 1  ;;  %v1565_v28 = vunpack.c.l.b16 %v1524_v13  ;;  %v828_v62 = vld [vmem:[%s3674_s28 + $0x34] sm:$0xf]  ;;  %v4305_v50 = vld [vmem:[%s3674_s28 + $0x38] sm:$0xff] }
  0x65   : > { %v4260_v11 = vrot.slane %v1365_v61, 1  ;;  %v1566_v15 = vunpack.c.l.b16 %v1525_v1  ;;  %v1801_v18 = vor.u32 %v1799_v63, %v1797_v5  ;;  %v4975_v30 = vmov 0  ;;  %v3470_v63 = vld [vmem:[%s4856_s1 + $0xa0] sm:$0xff] }
  0x66   : > { %v1174_v22 = vrot.slane %v1172_v25, 4  ;;  %vm4977_vm0 = vsmask.f32 7424  ;;  %vm4978_vm12 = vcmask 1046528   ;;  %v929_v61 = vshrl.u32 %v4231_v20, 16  ;;  %2086 = vmatpush.bf16.msra.mxu1 %v3470_v63  ;;  %v3490_v20 = vld [vmem:[%s4856_s1 + $0x100] sm:$0xff] }
  0x67   : > { %v928_v3 = vsel %vm4977_vm0, %v923_v60, %v927_v40  ;;  %v1380_v5 = vsel %vm4978_vm12, %v4200_v47, %v4260_v11  ;;  %v1577_v42 = vpack.c.b16 %v1566_v15, %v1565_v28  ;;  %v933_v13 = vshll.u32 %v4293_v34, 16  ;;  %2730 = vmatpush.bf16.msra.mxu0 %v3490_v20 }
  0x68   : > { %v1176_v47 = vsel %vm3846_vm13, %v1174_v22, %v3850_v46  ;;  %v3486_v46 = vld [vmem:[%s4856_s1 + $0xe0] sm:$0xff]  ;;  %v1807_v28 = vshrl.u32 %v4237_v36, 16  ;;  %v1811_v15 = vshll.u32 %v4305_v50, 16  ;;  %v1815_v63 = vshrl.u32 %v4305_v50, 16 }
  0x69   : > { %v1279_v2 = vunpack.c.l.b16 %v1176_v47  ;;  %v1280_v6 = vunpack.c.h.b16 %v1176_v47  ;;  %2530 = vmatpush.bf16.msra.mxu3 %v3486_v46 }
  0x6c   : > { %3137 = vmatmul.msk.bf16.gmra.mxu1 %vm4967_vm7, %v920_v19  ;;  %3169 = vmatmul.msk.bf16.gmra.mxu2 %vm4968_vm6, %v1378_v52  ;;  %vm1270_vm7 = vcmp.ne.s32.totalorder %v1266_v9, %v3802_v21  ;;  %vm1114_vm6 = vmpackc.low %vm4242_vm4, %vm4242_vm4  ;;  %v1805_v19 = vrot.slane %v1803_v10, 1  ;;  %v3474_v9 = vld [vmem:[%s4856_s1 + $0xc0] sm:$0xff] }
  0x6d   : > { %3201 = vmatmul.msk.bf16.gmra.mxu3 %vm4969_vm15, %v1576_v59  ;;  %vm1276_vm15 = vcmp.ne.s32.totalorder %v1272_v44, %v3791_v16  ;;  %vm4262_vm8 = vmpackc.low %vm1270_vm7, %vm1269_vm14  ;;  %v4267_v59 = vsel %vm1114_vm6, 65537, %v3598_v14  ;;  %vm4980_vm7 = vcmask 523264   ;;  %v1510_v44 = vld [vmem:[%s3674_s28 + $0x30] sm:$0xf]  ;;  %2280 = vmatpush.bf16.msra.mxu2 %v3474_v9  ;;  %v3445_v9 = vld [vmem:[%s3674_s28 + $0x38] sm:$0xff] }
  0x6e   : > { %3265 = vmatmul.msk.bf16.gmra.mxu0 %vm4970_vm11, %v1798_v27  ;;  %vm1277_vm11 = vcmp.ne.s32.totalorder %v1273_v43, %v3802_v21  ;;  %v827_v27 = vld [vmem:[%s3674_s28 + $0x30] sm:$0xf]  ;;  %v1178_v32 = vrot.slane %v4267_v59, 7  ;;  %vm4979_vm14 = vmmov %vm4977_vm0  ;;  %v1511_v43 = vld [vmem:[%s3674_s28 + $0x34] sm:$0xf]  ;;  %v935_v59 = vrot.slane %v933_v13, 1  ;;  %v1809_v22 = vor.u32 %v1807_v28, %v1805_v19 }
  0x6f   : > { %vm4271_vm4 = vmpackc.low %vm1277_vm11, %vm1276_vm15  ;;  %v1806_v14 = vsel %vm4979_vm14, %v1801_v18, %v1805_v19  ;;  %v1312_v33 = vsel %vm4262_vm8, %v827_v27, 0  ;;  %v1527_v60 = vsel %vm3657_vm1, %v1511_v43, 0  ;;  %vm1283_vm15 = vcmp.ne.s32.totalorder %v1279_v2, %v3791_v16  ;;  %v1513_v43 = vld [vmem:[%s3674_s28 + $0x3c] sm:$0xf]  ;;  %v3465_v2 = vld [vmem:[%s3674_s28 + $0x40] sm:$0xff] }
  0x70   : > { %v4976_v30 = vsel %vm4271_vm4, 4294967295, %v4975_v30  ;;  %v1313_v25 = vsel %vm4271_vm4, %v828_v62, 0  ;;  %vm4981_vm0 = vmmov %vm4980_vm7  ;;  %v1355_v51 = vunpack.c.l.b16 %v1312_v33  ;;  %v1179_v53 = vsel %vm3846_vm13, %v3866_v54, %v1178_v32 }
  0x71   : > { %vm4982_vm12 = vmmov %vm4981_vm0  ;;  %v1356_v37 = vunpack.c.l.b16 %v1313_v25  ;;  %v1286_v45 = vunpack.c.l.b16 %v1179_v53  ;;  %v1287_v54 = vunpack.c.h.b16 %v1179_v53  ;;  %vm4984_vm13 = vnez %v4906_v4 }
  0x72   : > { %vm4983_vm6 = vmmov %vm4981_vm0  ;;  %v1526_v10 = vsel %vm4984_vm13, %v1510_v44, 0  ;;  %vm1284_vm11 = vcmp.ne.s32.totalorder %v1280_v6, %v3802_v21  ;;  %v931_v18 = vor.u32 %v929_v61, %v927_v40  ;;  %v1568_v62 = vunpack.c.l.b16 %v1527_v60  ;;  %v1512_v44 = vld [vmem:[%s3674_s28 + $0x38] sm:$0xf] }
  0x73   : > { %v1366_v1 = vpack.c.b16 %v1356_v37, %v1355_v51  ;;  %vm1290_vm14 = vcmp.ne.s32.totalorder %v1286_v45, %v3791_v16  ;;  %v1567_v27 = vunpack.c.l.b16 %v1526_v10  ;;  %vm4990_vm13 = vcmask 1046528  }
  0x74   : > { %v1180_v53 = vrot.slane %v1178_v32, 4  ;;  %v937_v45 = vshrl.u32 %v4293_v34, 16  ;;  %v941_v32 = vshll.u32 %v3445_v9, 16  ;;  %v1819_v10 = vshll.u32 %v3465_v2, 16 }
  0x75   : > { %v1381_v36 = vrot.slane %v1366_v1, 1  ;;  %v1578_v25 = vpack.c.b16 %v1568_v62, %v1567_v27  ;;  %v1529_v1 = vsel %vm3657_vm1, %v1513_v43, 0 }
  0x76   : > { %v1293_v6 = vunpack.c.l.b16 %v1180_v53  ;;  %v1294_v61 = vunpack.c.h.b16 %v1180_v53  ;;  %v1570_v28 = vunpack.c.l.b16 %v1529_v1  ;;  %v943_v34 = vrot.slane %v941_v32, 1  ;;  %v4387_v53 = vld [vmem:[%s4857_s2] ss:$0 sm:$0xff] }
  0x77   : > { %v1382_v19 = vsel %vm4990_vm13, %v4260_v11, %v1381_v36  ;;  %v1821_v62 = vrot.slane %v1819_v10, 1  ;;  %v1823_v10 = vshrl.u32 %v3465_v2, 16  ;;  %v2339_v2 = vld [vmem:[%s3674_s28 + $0x14] sm:$0xf] }
  0x78   : > { %vm1297_vm13 = vcmp.ne.s32.totalorder %v1293_v6, %v3791_v16 }
  0x7c   : > { %3138 = vmatmul.msk.bf16.gmra.mxu1 %vm4980_vm7, %v928_v3  ;;  %3170 = vmatmul.msk.bf16.gmra.mxu2 %vm4981_vm0, %v1380_v5  ;;  %vm1291_vm7 = vcmp.ne.s32.totalorder %v1287_v54, %v3802_v21  ;;  %v1813_v3 = vrot.slane %v1811_v15, 1  ;;  %vm4327_vm0 = vmpackc.low %vm1284_vm11, %vm1283_vm15  ;;  %vm4992_vm15 = vcmask 523264   ;;  %v939_v15 = vor.u32 %v937_v45, %v935_v59 }
  0x7d   : > { %3202 = vmatmul.msk.bf16.gmra.mxu3 %vm4982_vm12, %v1577_v42  ;;  %v829_v42 = vld [vmem:[%s3674_s28 + $0x38] sm:$0xf]  ;;  %vm4333_vm12 = vmpackc.low %vm1291_vm7, %vm1290_vm14 }
  0x7e   : > { %3266 = vmatmul.msk.bf16.gmra.mxu0 %vm4983_vm6, %v1806_v14  ;;  %v830_v14 = vld [vmem:[%s3674_s28 + $0x3c] sm:$0xf]  ;;  %vm4989_vm6 = vsmask.f32 7424  ;;  %v1314_v51 = vsel %vm4327_vm0, %v829_v42, 0  ;;  %vm4993_vm11 = vmmov %vm4992_vm15  ;;  %v1817_v27 = vor.u32 %v1815_v63, %v1813_v3 }
  0x7f   : > { %v936_v33 = vsel %vm4989_vm6, %v931_v18, %v935_v59  ;;  %vm4991_vm4 = vmmov %vm4989_vm6  ;;  %v1315_v37 = vsel %vm4333_vm12, %v830_v14, 0  ;;  %v1357_v11 = vunpack.c.l.b16 %v1314_v51  ;;  %vm1298_vm6 = vcmp.ne.s32.totalorder %v1294_v61, %v3802_v21  ;;  %v831_v18 = vld [vmem:[%s3674_s28 + $0x40] sm:$0x1]  ;;  %v4367_v42 = vld [vmem:[%s3674_s28 + $0x48] sm:$0x1] }
  0x80   : > { %v1814_v47 = vsel %vm4991_vm4, %v1809_v22, %v1813_v3  ;;  %vm4994_vm14 = vmmov %vm4993_vm11  ;;  %v1358_v46 = vunpack.c.l.b16 %v1315_v37  ;;  %vm4996_vm4 = vnez %v4900_v38  ;;  %v874_v14 = vunpack.c.l.b16 %v831_v18 }
  0x81   : > { %vm4995_vm7 = vmmov %vm4993_vm11  ;;  %v1528_v13 = vsel %vm4996_vm4, %v1512_v44, 0  ;;  %v945_v44 = vshrl.u32 %v3445_v9, 16 }
  0x82   : > { %v1367_v54 = vpack.c.b16 %v1358_v46, %v1357_v11  ;;  %v1569_v60 = vunpack.c.l.b16 %v1528_v13  ;;  %v1515_v11 = vld [vmem:[%s3674_s28 + $0x44] sm:$0xf] }
  0x83   : > { %v1531_v9 = vsel %vm3657_vm1, %v1515_v11, 0 }
  0x84   : > { %v1383_v20 = vrot.slane %v1367_v54, 1  ;;  %v1579_v50 = vpack.c.b16 %v1570_v28, %v1569_v60  ;;  %v947_v28 = vor.u32 %v945_v44, %v943_v34  ;;  %v2588_v44 = vld [vmem:[%s3674_s28 + $0x10] sm:$0xe] }
  0x8c   : > { %3139 = vmatmul.msk.bf16.gmra.mxu1 %vm4992_vm15, %v936_v33  ;;  %3171 = vmatmul.msk.bf16.gmra.mxu2 %vm4993_vm11, %v1382_v19  ;;  %vm4362_vm15 = vmpackc.low %vm1298_vm6, %vm1297_vm13  ;;  %vm4999_vm11 = vsmask.f32 7424  ;;  %v1753_v33 = vunpack.c.l.b16 %v4367_v42  ;;  %vm5002_vm13 = vcmask 523264  }
  0x8d   : > { %3203 = vmatmul.msk.bf16.gmra.mxu3 %vm4994_vm14, %v1578_v25  ;;  %v944_v21 = vsel %vm4999_vm11, %v939_v15, %v943_v34  ;;  %vm5000_vm14 = vcmask 1046528   ;;  %v1316_v3 = vsel %vm4362_vm15, %v831_v18, 0  ;;  %vm5003_vm6 = vmmov %vm5002_vm13 }
  0x8e   : > { %3267 = vmatmul.msk.bf16.gmra.mxu0 %vm4995_vm7, %v1814_v47  ;;  %v1384_v59 = vsel %vm5000_vm14, %v1381_v36, %v1383_v20  ;;  %vm5001_vm7 = vmmov %vm4999_vm11  ;;  %v883_v47 = vpack.c.b16 %v874_v14, %v874_v14  ;;  %v1359_v51 = vunpack.c.l.b16 %v1316_v3  ;;  %v1514_v36 = vld [vmem:[%s3674_s28 + $0x40] sm:$0xf]  ;;  %v1762_v37 = vpack.c.b16 %v1753_v33, %v1753_v33  ;;  %v1697_v3 = vld [vmem:[%s3674_s28 + $0x14] sm:$0xf] }
  0x8f   : > { %v1822_v25 = vsel %vm5001_vm7, %v1817_v27, %v1821_v62  ;;  %vm5004_vm4 = vmmov %vm5003_vm6  ;;  %v1572_v27 = vunpack.c.l.b16 %v1531_v9  ;;  %v1944_v33 = vld [vmem:[%s3674_s28 + $0x8] sm:$0xe] }
  0x90   : > { %vm5005_vm11 = vmmov %vm5004_vm4  ;;  %v949_v61 = vshll.u32 %v883_v47, 16  ;;  %v1368_v45 = vpack.c.b16 %v1359_v51, %v1359_v51  ;;  %v1827_v1 = vshll.u32 %v1762_v37, 16 }
  0x91   : > { %vm5007_vm14 = vmmov %vm5001_vm7  ;;  %vm5008_vm7 = vcmask 1046528  }
  0x92   : > { %v951_v15 = vrot.slane %v949_v61, 1  ;;  %v1385_v18 = vrot.slane %v1368_v45, 1  ;;  %v1829_v14 = vrot.slane %v1827_v1, 1 }
  0x94   : > { %v1386_v37 = vsel %vm5008_vm7, %v1383_v20, %v1385_v18  ;;  %v3478_v20 = vld [vmem:[%s3674_s28 + $0x10] sm:$0xff] }
  0x95   : > { %v2410_v49 = vshll.u32 %v3478_v20, 16 }
  0x99   : > { %v4369_v16 = vpop.f32.mrf.mxu1 }
  0x9b   : > { %v4376_v19 = vpop.f32.mrf.mxu0 }
  0x9c   : > { %3140 = vmatmul.msk.bf16.gmra.mxu1 %vm5002_vm13, %v944_v21  ;;  %3172 = vmatmul.msk.bf16.gmra.mxu2 %vm5003_vm6, %v1384_v59  ;;  %v1825_v21 = vor.u32 %v1823_v10, %v1821_v62  ;;  %v1696_v59 = vld [vmem:[%s3674_s28 + $0x10] sm:$0xf]  ;;  %v2340_v62 = vld [vmem:[%s3674_s28 + $0x18] sm:$0xf]  ;;  %vm5009_vm13 = vnez %v4914_v17  ;;  %vm5010_vm6 = vnez %v4918_v39  ;;  %v2145_v17 = vld [vmem:[%s3674_s28 + $0x14] sm:$0xf] }
  0x9d   : > { %3204 = vmatmul.msk.bf16.gmra.mxu3 %vm5004_vm4, %v1579_v50  ;;  %vm5006_vm4 = vnez %v4908_v12  ;;  %v1695_v50 = vld [vmem:[%s3674_s28 + $0xc] sm:$0xf]  ;;  %v1945_v45 = vsel %vm5009_vm13, %v1944_v33, 0  ;;  %v1948_v9 = vsel %vm5010_vm6, %v1697_v3, 0 }
  0x9e   : > { %3268 = vmatmul.msk.bf16.gmra.mxu0 %vm5005_vm11, %v1822_v25  ;;  %v1530_v32 = vsel %vm5006_vm4, %v1514_v36, 0  ;;  %v1946_v47 = vsel %vm3927_vm5, %v1695_v50, 0  ;;  %v952_v36 = vsel %vm5007_vm14, %v947_v28, %v951_v15  ;;  %vm5011_vm11 = vmmov %vm5007_vm14  ;;  %v2590_v28 = vsel %vm3927_vm5, %v2339_v2, 0 }
  0x9f   : > { %v779_v46 = vpop.f32.mrf.mxu2  ;;  %v1571_v60 = vunpack.c.l.b16 %v1530_v32  ;;  %v1947_v32 = vsel %vm3951_vm3, %v1696_v59, 0  ;;  %v1830_v10 = vsel %vm5011_vm11, %v1825_v21, %v1829_v14  ;;  %v2591_v15 = vsel %vm3951_vm3, %v2340_v62, 0 }
  0xa0   : > { %v4391_v43 = vadd.f32 %v4387_v53, %v779_v46  ;;  %v789_v6 = vpop.f32.mrf.mxu3  ;;  %v2341_v46 = vld [vmem:[%s3674_s28 + $0x1c] sm:$0xf]  ;;  %vm5012_vm14 = vcmask 523264   ;;  %v1988_v50 = vunpack.c.l.b16 %v1945_v45  ;;  %v1989_v59 = vunpack.c.l.b16 %v1946_v47 }
  0xa1   : > { %v4396_v54 = vadd.f32 %v4387_v53, %v789_v6  ;;  %v4398_v13 = vpop.f32.mrf.mxu1  ;;  %v1580_v11 = vpack.c.b16 %v1572_v27, %v1571_v60  ;;  %v2589_v60 = vsel %vm5009_vm13, %v2588_v44, 0  ;;  %v2592_v18 = vsel %vm5010_vm6, %v2341_v46, 0  ;;  %v2144_v27 = vld [vmem:[%s3674_s28 + $0x10] sm:$0xf]  ;;  %vm5013_vm7 = vmmov %vm5012_vm14 }
  0xa2   : > { %v1990_v14 = vunpack.c.l.b16 %v1947_v32  ;;  %v1991_v21 = vunpack.c.l.b16 %v1948_v9  ;;  %vm5014_vm11 = vmmov %vm5013_vm7  ;;  %v2632_v3 = vunpack.c.l.b16 %v2589_v60  ;;  %v2633_v39 = vunpack.c.l.b16 %v2590_v28 }
  0xa3   : > { %v4402_v63 = vpop.f32.mrf.mxu0  ;;  %vm5015_vm13 = vmmov %vm5013_vm7  ;;  %v2634_v33 = vunpack.c.l.b16 %v2591_v15  ;;  %vm5016_vm5 = vnez %v4894_v23  ;;  %v2161_v62 = vsel %vm3657_vm1, %v2145_v17, 0  ;;  %v2408_v45 = vshrl.u32 %v3478_v20, 16  ;;  %v1698_v20 = vld [vmem:[%s3674_s28 + $0x18] sm:$0xf]  ;;  %v1699_v17 = vld [vmem:[%s3674_s28 + $0x1c] sm:$0xf] }
  0xa4   : > { %v2160_v2 = vsel %vm5016_vm5, %v2144_v27, 0  ;;  %v2412_v23 = vrot.slane %v2410_v49, 1  ;;  %v2415_v32 = vshll.u32 %v4449_v35, 16  ;;  %v2202_v27 = vunpack.c.l.b16 %v2161_v62  ;;  %vm5024_vm5 = vmmov %vm5015_vm13 }
  0xa5   : > { %v2201_v28 = vunpack.c.l.b16 %v2160_v2  ;;  %vm5018_vm3 = vcmask 1046528   ;;  %vm5020_vm6 = vsmask.f32 7424 }
  0xa7   : > { %v781_v25 = vpop.f32.mrf.mxu2 }
  0xa8   : > { %v4412_v34 = vadd.f32 %v4387_v53, %v781_v25  ;;  %v791_v51 = vpop.f32.mrf.mxu3  ;;  %v2635_v25 = vunpack.c.l.b16 %v2592_v18 }
  0xa9   : > { %v4420_v6 = vadd.f32 %v4387_v53, %v791_v51  ;;  %v4422_v61 = vpop.f32.mrf.mxu1 }
  0xaa   : > { %v2650_v60 = vpack.c.b16 %v2635_v25, %v2634_v33  ;;  %v2217_v25 = vpack.c.b16 %v2202_v27, %v2201_v28  ;;  %v4501_v27 = vld [vmem:[%s3674_s28 + $0x20] sm:$0xff] }
  0xab   : > { %v4431_v1 = vpop.f32.mrf.mxu0 }
  0xac   : > { %3141 = vmatmul.msk.bf16.gmra.mxu1 %vm5012_vm14, %v952_v36  ;;  %3173 = vmatmul.msk.bf16.gmra.mxu2 %vm5013_vm7, %v1386_v37  ;;  %v2005_v37 = vpack.c.b16 %v1989_v59, %v1988_v50  ;;  %v2413_v50 = vor.u32 %v2412_v23, %v2408_v45  ;;  %v2417_v59 = vrot.slane %v2415_v32, 1  ;;  %vm5021_vm14 = vnez %v4922_v29  ;;  %v2147_v29 = vld [vmem:[%s3674_s28 + $0x1c] sm:$0xf] }
  0xad   : > { %3205 = vmatmul.msk.bf16.gmra.mxu3 %vm5014_vm11, %v1580_v11  ;;  %v2006_v11 = vpack.c.b16 %v1991_v21, %v1990_v14  ;;  %v4468_v21 = vrot.slane %v2650_v60, 1  ;;  %v1949_v62 = vsel %vm5021_vm14, %v1698_v20, 0  ;;  %vm5022_vm7 = vnez %v4931_v57  ;;  %vm5023_vm11 = vmmov %vm5018_vm3 }
  0xae   : > { %3269 = vmatmul.msk.bf16.gmra.mxu0 %vm5015_vm13, %v1830_v10  ;;  %v2649_v10 = vpack.c.b16 %v2633_v39, %v2632_v3  ;;  %v2014_v15 = vrot.slane %v2005_v37, 1  ;;  %v1992_v28 = vunpack.c.l.b16 %v1949_v62  ;;  %v800_v57 = vadd.f32 %v4387_v53, %v4402_v63 }
  0xaf   : > { %v784_v51 = vpop.f32.mrf.mxu2  ;;  %v4466_v18 = vrot.slane %v2006_v11, 1  ;;  %v2418_v11 = vsel %vm5020_vm6, %v2413_v50, %v2417_v59 }
  0xb0   : > { %v4454_v47 = vadd.f32 %v4387_v53, %v784_v51  ;;  %v794_v36 = vpop.f32.mrf.mxu3  ;;  %v2658_v14 = vrot.slane %v2649_v10, 1  ;;  %v2342_v51 = vld [vmem:[%s3674_s28 + $0x20] sm:$0xf] }
  0xb1   : > { %v4459_v46 = vadd.f32 %v4387_v53, %v794_v36  ;;  %v4461_v44 = vpop.f32.mrf.mxu1  ;;  %v2343_v36 = vld [vmem:[%s3674_s28 + $0x24] sm:$0xf]  ;;  %v2016_v33 = vsel %vm5018_vm3, %v2014_v15, %v4466_v18  ;;  %v2593_v10 = vsel %vm5021_vm14, %v2342_v51, 0  ;;  %vm5025_vm3 = vmmov %vm5024_vm5  ;;  %vm5027_vm14 = vnez %v4910_v26 }
  0xb2   : > { %v2660_v32 = vsel %vm5023_vm11, %v2658_v14, %v4468_v21  ;;  %v2594_v60 = vsel %vm5022_vm7, %v2343_v36, 0  ;;  %vm5026_vm6 = vmmov %vm5025_vm3  ;;  %v2636_v50 = vunpack.c.l.b16 %v2593_v10 }
  0xb3   : > { %5017 = vst [vmem:[#allocation2_spill] sm:$0xff] %v4459_v46  ;;  %v4464_v9 = vpop.f32.mrf.mxu0  ;;  %v799_v46 = vadd.f32 %v4387_v53, %v4376_v19  ;;  %v1950_v19 = vsel %vm5022_vm7, %v1699_v17, 0  ;;  %v2637_v14 = vunpack.c.l.b16 %v2594_v60  ;;  %vm5028_vm7 = vmmov %vm5023_vm11  ;;  %vm5029_vm11 = vsmask.f32 7424 }
  0xb4   : > { %v1993_v15 = vunpack.c.l.b16 %v1950_v19 }
  0xb6   : > { %v2007_v51 = vpack.c.b16 %v1993_v15, %v1992_v28 }
  0xb7   : > { %v786_v49 = vpop.f32.mrf.mxu2 }
  0xb8   : > { %v4477_v3 = vadd.f32 %v4387_v53, %v786_v49  ;;  %v796_v39 = vpop.f32.mrf.mxu3 }
  0xb9   : > { %v4482_v2 = vadd.f32 %v4387_v53, %v796_v39  ;;  %v1010_v37 = vpop.f32.mrf.mxu1 }
  0xba   : > { %v1050_v45 = vadd.f32 %v1010_v37, %v799_v46  ;;  %v2146_v46 = vld [vmem:[%s3674_s28 + $0x18] sm:$0xf]  ;;  %v2423_v37 = vshll.u32 %v4501_v27, 16 }
  0xbb   : > { %5019 = vst [vmem:[#allocation3_spill] sm:$0xff] %v4482_v2  ;;  %v1888_v23 = vpop.f32.mrf.mxu0  ;;  %v2162_v36 = vsel %vm5027_vm14, %v2146_v46, 0  ;;  %v1700_v46 = vld [vmem:[%s3674_s28 + $0x20] sm:$0xf]  ;;  %v2345_v2 = vld [vmem:[%s3674_s28 + $0x2c] sm:$0xf]  ;;  %vm5033_vm14 = vmmov %vm5025_vm3 }
  0xbc   : > { %3294 = vmatmul.msk.bf16.vlgmr.msra.gmra.mxu1 %vm5015_vm13, %v2016_v33  ;;  %3326 = vmatmul.msk.bf16.vlgmr.msra.gmra.mxu2 %vm5024_vm5, %v2217_v25  ;;  %v2163_v33 = vsel %vm3657_vm1, %v2147_v29, 0  ;;  %v2419_v25 = vshrl.u32 %v4449_v35, 16  ;;  %v2203_v26 = vunpack.c.l.b16 %v2162_v36  ;;  %v2425_v28 = vrot.slane %v2423_v37, 1  ;;  %v1701_v35 = vld [vmem:[%s3674_s28 + $0x24] sm:$0xf]  ;;  %vm5030_vm13 = vmmov %vm5028_vm7 }
  0xbd   : > { %3390 = vmatmul.msk.bf16.vlgmr.msra.gmra.mxu3 %vm5025_vm3, %v2418_v11  ;;  %v2651_v11 = vpack.c.b16 %v2637_v14, %v2636_v50  ;;  %v801_v50 = vadd.f32 %v4387_v53, %v4431_v1  ;;  %v1951_v36 = vsel %vm4067_vm2, %v1700_v46, 0  ;;  %v1952_v1 = vsel %vm4074_vm9, %v1701_v35, 0  ;;  %vm5031_vm5 = vmmov %vm5025_vm3 }
  0xbe   : > { %3422 = vmatmul.msk.bf16.vlgmr.msra.gmra.mxu0 %vm5026_vm6, %v2660_v32  ;;  %v2204_v32 = vunpack.c.l.b16 %v2163_v33  ;;  %v2421_v60 = vor.u32 %v2419_v25, %v2417_v59  ;;  %v2596_v37 = vsel %vm4074_vm9, %v2345_v2, 0  ;;  %vm5032_vm6 = vmmov %vm5025_vm3  ;;  %v802_v2 = vadd.f32 %v4387_v53, %v4464_v9 }
  0xbf   : > { %v1444_v20 = vpop.f32.mrf.mxu2  ;;  %v4516_v15 = vrot.slane %v2651_v11, 1  ;;  %v1995_v11 = vunpack.c.l.b16 %v1952_v1  ;;  %vm5034_vm9 = vnez %v4896_v24 }
  0xc0   : > { %v1484_v17 = vadd.f32 %v1444_v20, %v1050_v45  ;;  %v1638_v49 = vpop.f32.mrf.mxu3  ;;  %v4512_v45 = vrot.slane %v2007_v51, 1  ;;  %v2344_v20 = vld [vmem:[%s3674_s28 + $0x28] sm:$0xf]  ;;  %v2426_v59 = vsel %vm5029_vm11, %v2421_v60, %v2425_v28  ;;  %v2149_v60 = vld [vmem:[%s3674_s28 + $0x24] sm:$0xf] }
  0xc1   : > { %v1012_v39 = vpop.f32.mrf.mxu1  ;;  %v2662_v51 = vsel %vm5030_vm13, %v4468_v21, %v4516_v15  ;;  %v2595_v25 = vsel %vm4067_vm2, %v2344_v20, 0  ;;  %v1994_v21 = vunpack.c.l.b16 %v1951_v36  ;;  %vm5035_vm2 = vmmov %vm5028_vm7  ;;  %vm5038_vm13 = vnez %v4950_v58 }
  0xc2   : > { %v1678_v63 = vadd.f32 %v1638_v49, %v1484_v17  ;;  %v1051_v62 = vadd.f32 %v1012_v39, %v800_v57  ;;  %v2018_v17 = vsel %vm5028_vm7, %v4466_v18, %v4512_v45  ;;  %v2638_v48 = vunpack.c.l.b16 %v2595_v25  ;;  %v1702_v25 = vld [vmem:[%s3674_s28 + $0x28] sm:$0xf]  ;;  %vm5036_vm7 = vmmov %vm5029_vm11 }
  0xc3   : > { %v1890_v19 = vpop.f32.mrf.mxu0  ;;  %vm5037_vm11 = vmmov %vm5035_vm2 }
  0xc4   : > { %v4514_v10 = vadd.f32 %v1888_v23, %v1678_v63  ;;  %v2218_v23 = vpack.c.b16 %v2204_v32, %v2203_v26  ;;  %v4547_v26 = vld [vmem:[%s3674_s28 + $0x28] sm:$0xff]  ;;  %v2639_v32 = vunpack.c.l.b16 %v2596_v37 }
  0xc7   : > { %v1446_v29 = vpop.f32.mrf.mxu2 }
  0xc8   : > { %v1485_v14 = vadd.f32 %v1446_v29, %v1051_v62  ;;  %v1640_v57 = vpop.f32.mrf.mxu3  ;;  %v2148_v62 = vld [vmem:[%s3674_s28 + $0x20] sm:$0xf]  ;;  %v2008_v29 = vpack.c.b16 %v1995_v11, %v1994_v21  ;;  %v2346_v21 = vld [vmem:[%s3674_s28 + $0x30] sm:$0xf]  ;;  %v2347_v11 = vld [vmem:[%s3674_s28 + $0x34] sm:$0xf] }
  0xc9   : > { %v1015_v49 = vpop.f32.mrf.mxu1 }
  0xca   : > { %v1679_v39 = vadd.f32 %v1640_v57, %v1485_v14  ;;  %v1052_v33 = vadd.f32 %v1015_v49, %v801_v50  ;;  %v2165_v50 = vsel %vm3657_vm1, %v2149_v60, 0  ;;  %v2427_v14 = vshrl.u32 %v4501_v27, 16  ;;  %v1703_v27 = vld [vmem:[%s3674_s28 + $0x2c] sm:$0xf] }
  0xcb   : > { %v1893_v18 = vpop.f32.mrf.mxu0  ;;  %v2431_v57 = vshll.u32 %v4547_v26, 16 }
  0xcc   : > { %3295 = vmatmul.msk.bf16.gmra.mxu1 %vm5031_vm5, %v2018_v17  ;;  %3327 = vmatmul.msk.bf16.gmra.mxu2 %vm5025_vm3, %v2218_v23  ;;  %v4541_v63 = vadd.f32 %v1890_v19, %v1679_v39  ;;  %v2164_v19 = vsel %vm5034_vm9, %v2148_v62, 0  ;;  %v2652_v17 = vpack.c.b16 %v2639_v32, %v2638_v48  ;;  %v2429_v1 = vor.u32 %v2427_v14, %v2425_v28  ;;  %vm5039_vm5 = vmmov %vm5025_vm3 }
  0xcd   : > { %3391 = vmatmul.msk.bf16.gmra.mxu3 %vm5032_vm6, %v2426_v59  ;;  %v4558_v59 = vrot.slane %v2008_v29, 1  ;;  %v2205_v24 = vunpack.c.l.b16 %v2164_v19  ;;  %v2433_v39 = vrot.slane %v2431_v57, 1  ;;  %v803_v62 = vadd.f32 %v4387_v53, %v4369_v16  ;;  %vm5040_vm6 = vmmov %vm5025_vm3  ;;  %v2150_v57 = vld [vmem:[%s3674_s28 + $0x28] sm:$0xf] }
  0xce   : > { %3423 = vmatmul.msk.bf16.gmra.mxu0 %vm5033_vm14, %v2662_v51  ;;  %v2206_v51 = vunpack.c.l.b16 %v2165_v50  ;;  %v1954_v16 = vsel %vm5038_vm13, %v1703_v27, 0  ;;  %v2597_v19 = vsel %vm4127_vm10, %v2346_v21, 0  ;;  %vm5041_vm14 = vmmov %vm5025_vm3  ;;  %v2435_v21 = vshrl.u32 %v4547_v26, 16  ;;  %v1705_v26 = vld [vmem:[%s3674_s28 + $0x34] sm:$0xf] }
  0xcf   : > { %v1449_v55 = vpop.f32.mrf.mxu2  ;;  %v2020_v60 = vsel %vm5035_vm2, %v4512_v45, %v4558_v59  ;;  %v2434_v28 = vsel %vm5036_vm7, %v2429_v1, %v2433_v39  ;;  %v1997_v50 = vunpack.c.l.b16 %v1954_v16  ;;  %v2640_v56 = vunpack.c.l.b16 %v2597_v19  ;;  %v1704_v16 = vld [vmem:[%s3674_s28 + $0x30] sm:$0xf]  ;;  %v2349_v19 = vld [vmem:[%s3674_s28 + $0x3c] sm:$0xf]  ;;  %vm5043_vm9 = vmmov %vm5035_vm2 }
  0xd0   : > { %v1486_v46 = vadd.f32 %v1449_v55, %v1052_v33  ;;  %v1643_v35 = vpop.f32.mrf.mxu3  ;;  %v4562_v33 = vrot.slane %v2652_v17, 1  ;;  %v4593_v17 = vld [vmem:[%s3674_s28 + $0x30] sm:$0xff]  ;;  %vm5044_vm2 = vmmov %vm5036_vm7 }
  0xd1   : > { %v1017_v20 = vpop.f32.mrf.mxu1  ;;  %vm5045_vm7 = vmmov %vm5043_vm9 }
  0xd2   : > { %v1680_v9 = vadd.f32 %v1643_v35, %v1486_v46  ;;  %v1053_v23 = vadd.f32 %v1017_v20, %v802_v2  ;;  %v2664_v2 = vsel %vm5037_vm11, %v4516_v15, %v4562_v33  ;;  %v1953_v46 = vsel %vm4127_vm10, %v1702_v25, 0 }
  0xd3   : > { %v1895_v49 = vpop.f32.mrf.mxu0  ;;  %v2598_v20 = vsel %vm5038_vm13, %v2347_v11, 0  ;;  %v1996_v15 = vunpack.c.l.b16 %v1953_v46  ;;  %vm5042_vm10 = vnez %v4904_v0  ;;  %v2439_v11 = vshll.u32 %v4593_v17, 16 }
  0xd4   : > { %v4560_v36 = vadd.f32 %v1893_v18, %v1680_v9  ;;  %v2219_v18 = vpack.c.b16 %v2206_v51, %v2205_v24  ;;  %v2641_v9 = vunpack.c.l.b16 %v2598_v20  ;;  %v804_v24 = vadd.f32 %v4387_v53, %v4398_v13 }
  0xd5   : > { %v2009_v25 = vpack.c.b16 %v1997_v50, %v1996_v15  ;;  %v805_v20 = vadd.f32 %v4387_v53, %v4422_v61  ;;  %vm5046_vm11 = vnez %v4961_v7  ;;  %vm5047_vm13 = vnez %v4963_v41 }
  0xd6   : > { %v1956_v61 = vsel %vm5047_vm13, %v1705_v26, 0 }
  0xd7   : > { %v1451_v37 = vpop.f32.mrf.mxu2 }
  0xd8   : > { %v1487_v48 = vadd.f32 %v1451_v37, %v1053_v23  ;;  %v1645_v32 = vpop.f32.mrf.mxu3  ;;  %v2151_v23 = vld [vmem:[%s3674_s28 + $0x2c] sm:$0xf] }
  0xd9   : > { %v1020_v55 = vpop.f32.mrf.mxu1  ;;  %v2167_v37 = vsel %vm3657_vm1, %v2151_v23, 0  ;;  %v1955_v23 = vsel %vm5046_vm11, %v1704_v16, 0  ;;  %v2443_v16 = vshrl.u32 %v4593_v17, 16  ;;  %v1707_v17 = vld [vmem:[%s3674_s28 + $0x3c] sm:$0xf] }
  0xda   : > { %v1681_v35 = vadd.f32 %v1645_v32, %v1487_v48  ;;  %v1054_v29 = vadd.f32 %v1020_v55, %v803_v62  ;;  %v2653_v62 = vpack.c.b16 %v2641_v9, %v2640_v56 }
  0xdb   : > { %v1898_v45 = vpop.f32.mrf.mxu0 }
  0xdc   : > { %3296 = vmatmul.msk.bf16.gmra.mxu1 %vm5039_vm5, %v2020_v60  ;;  %3328 = vmatmul.msk.bf16.gmra.mxu2 %vm5025_vm3, %v2219_v18  ;;  %v4587_v14 = vadd.f32 %v1895_v49, %v1681_v35  ;;  %v2166_v49 = vsel %vm5042_vm10, %v2150_v57, 0  ;;  %v4604_v60 = vrot.slane %v2009_v25, 1  ;;  %v2208_v18 = vunpack.c.l.b16 %v2167_v37  ;;  %vm5048_vm5 = vmmov %vm5025_vm3  ;;  %v4639_v37 = vld [vmem:[%s3674_s28 + $0x38] sm:$0xff] }
  0xdd   : > { %3392 = vmatmul.msk.bf16.gmra.mxu3 %vm5040_vm6, %v2434_v28  ;;  %v2207_v0 = vunpack.c.l.b16 %v2166_v49  ;;  %v2437_v28 = vor.u32 %v2435_v21, %v2433_v39  ;;  %v4608_v46 = vrot.slane %v2653_v62, 1  ;;  %v1999_v25 = vunpack.c.l.b16 %v1956_v61  ;;  %vm5049_vm6 = vmmov %vm5025_vm3 }
  0xde   : > { %3424 = vmatmul.msk.bf16.gmra.mxu0 %vm5041_vm14, %v2664_v2  ;;  %v2441_v2 = vrot.slane %v2439_v11, 1  ;;  %v2022_v57 = vsel %vm5043_vm9, %v4558_v59, %v4604_v60  ;;  %vm5050_vm14 = vmmov %vm5025_vm3  ;;  %v2153_v11 = vld [vmem:[%s3674_s28 + $0x34] sm:$0xf]  ;;  %v806_v62 = vadd.f32 %v4387_v53, %v4461_v44  ;;  %vm5051_vm10 = vnez %v4898_v31 }
  0xdf   : > { %v1454_v58 = vpop.f32.mrf.mxu2  ;;  %v2666_v9 = vsel %vm5045_vm7, %v4562_v33, %v4608_v46  ;;  %v1998_v33 = vunpack.c.l.b16 %v1955_v23  ;;  %v2447_v26 = vshll.u32 %v4639_v37, 16  ;;  %v2351_v23 = vld [vmem:[%s3674_s28 + $0x44] sm:$0xf]  ;;  %vm5052_vm9 = vmmov %vm5045_vm7 }
  0xe0   : > { %v1488_v51 = vadd.f32 %v1454_v58, %v1054_v29  ;;  %v1648_v1 = vpop.f32.mrf.mxu3  ;;  %v2348_v29 = vld [vmem:[%s3674_s28 + $0x38] sm:$0xf]  ;;  %v2442_v39 = vsel %vm5044_vm2, %v2437_v28, %v2441_v2  ;;  %v2169_v28 = vsel %vm3657_vm1, %v2153_v11, 0 }
  0xe1   : > { %v1022_v27 = vpop.f32.mrf.mxu1 }
  0xe2   : > { %v1682_v13 = vadd.f32 %v1648_v1, %v1488_v51  ;;  %v1055_v48 = vadd.f32 %v1022_v27, %v804_v24  ;;  %v2599_v51 = vsel %vm5046_vm11, %v2348_v29, 0  ;;  %v2600_v1 = vsel %vm5047_vm13, %v2349_v19, 0  ;;  %v2152_v27 = vld [vmem:[%s3674_s28 + $0x30] sm:$0xf]  ;;  %vm5054_vm13 = vmmov %vm5025_vm3 }
  0xe3   : > { %v1900_v32 = vpop.f32.mrf.mxu0  ;;  %v2642_v7 = vunpack.c.l.b16 %v2599_v51  ;;  %v2643_v21 = vunpack.c.l.b16 %v2600_v1  ;;  %vm5053_vm11 = vnez %v4976_v30 }
  0xe4   : > { %v4606_v55 = vadd.f32 %v1898_v45, %v1682_v13  ;;  %v2220_v45 = vpack.c.b16 %v2208_v18, %v2207_v0  ;;  %v2010_v0 = vpack.c.b16 %v1999_v25, %v1998_v33  ;;  %v1958_v25 = vsel %vm5053_vm11, %v1707_v17, 0 }
  0xe5   : > { %v2602_v11 = vsel %vm5053_vm11, %v2351_v23, 0 }
  0xe6   : > { %v4650_v19 = vrot.slane %v2010_v0, 1  ;;  %v2155_v0 = vld [vmem:[%s3674_s28 + $0x3c] sm:$0xf] }
  0xe7   : > { %v1456_v35 = vpop.f32.mrf.mxu2 }
  0xe8   : > { %v1489_v15 = vadd.f32 %v1456_v35, %v1055_v48  ;;  %v1650_v50 = vpop.f32.mrf.mxu3  ;;  %v2654_v35 = vpack.c.b16 %v2643_v21, %v2642_v7 }
  0xe9   : > { %v1025_v56 = vpop.f32.mrf.mxu1 }
  0xea   : > { %v1683_v58 = vadd.f32 %v1650_v50, %v1489_v15  ;;  %v1056_v24 = vadd.f32 %v1025_v56, %v805_v20  ;;  %v2210_v20 = vunpack.c.l.b16 %v2169_v28  ;;  %v2445_v50 = vor.u32 %v2443_v16, %v2441_v2  ;;  %v1706_v56 = vld [vmem:[%s3674_s28 + $0x38] sm:$0xf] }
  0xeb   : > { %v1903_v59 = vpop.f32.mrf.mxu0  ;;  %v1957_v33 = vsel %vm4262_vm8, %v1706_v56, 0 }
  0xec   : > { %3297 = vmatmul.msk.bf16.gmra.mxu1 %vm5048_vm5, %v2022_v57  ;;  %3329 = vmatmul.msk.bf16.gmra.mxu2 %vm5025_vm3, %v2220_v45  ;;  %v4633_v49 = vadd.f32 %v1900_v32, %v1683_v58  ;;  %v2168_v32 = vsel %vm5051_vm10, %v2152_v27, 0  ;;  %v2449_v57 = vrot.slane %v2447_v26, 1  ;;  %v4654_v45 = vrot.slane %v2654_v35, 1  ;;  %vm5055_vm5 = vmmov %vm5025_vm3 }
  0xed   : > { %3393 = vmatmul.msk.bf16.gmra.mxu3 %vm5049_vm6, %v2442_v39  ;;  %v2209_v31 = vunpack.c.l.b16 %v2168_v32  ;;  %vm5056_vm6 = vmmov %vm5025_vm3  ;;  %v2171_v35 = vsel %vm3657_vm1, %v2155_v0, 0 }
  0xee   : > { %3425 = vmatmul.msk.bf16.gmra.mxu0 %vm5050_vm14, %v2666_v9  ;;  %v2350_v9 = vld [vmem:[%s3674_s28 + $0x40] sm:$0xf]  ;;  %v2668_v2 = vsel %vm5045_vm7, %v4608_v46, %v4654_v45  ;;  %v2000_v46 = vunpack.c.l.b16 %v1957_v33  ;;  %v2212_v17 = vunpack.c.l.b16 %v2171_v35  ;;  %vm5058_vm14 = vmmov %vm5045_vm7 }
  0xef   : > { %v1459_v41 = vpop.f32.mrf.mxu2  ;;  %v2221_v51 = vpack.c.b16 %v2210_v20, %v2209_v31  ;;  %v2601_v21 = vsel %vm4262_vm8, %v2350_v9, 0  ;;  %vm5057_vm8 = vnez %v4906_v4  ;;  %vm5059_vm10 = vmmov %vm5044_vm2 }
  0xf0   : > { %v1490_v13 = vadd.f32 %v1459_v41, %v1056_v24  ;;  %v1653_v48 = vpop.f32.mrf.mxu3  ;;  %v2024_v24 = vsel %vm5052_vm9, %v4604_v60, %v4650_v19  ;;  %v2001_v41 = vunpack.c.l.b16 %v1958_v25  ;;  %v2644_v52 = vunpack.c.l.b16 %v2601_v21  ;;  %vm5060_vm9 = vmmov %vm5045_vm7 }
  0xf1   : > { %v1027_v18 = vpop.f32.mrf.mxu1 }
  0xf2   : > { %v1684_v53 = vadd.f32 %v1653_v48, %v1490_v13  ;;  %v1057_v44 = vadd.f32 %v1027_v18, %v806_v62  ;;  %v4684_v13 = vld [vmem:[%s3674_s28 + $0x40] sm:$0xff]  ;;  %v2645_v48 = vunpack.c.l.b16 %v2602_v11  ;;  %v2011_v28 = vpack.c.b16 %v2001_v41, %v2000_v46 }
  0xf3   : > { %v1905_v29 = vpop.f32.mrf.mxu0 }
  0xf4   : > { %v4652_v15 = vadd.f32 %v1903_v59, %v1684_v53  ;;  %v2450_v59 = vsel %vm5044_vm2, %v2445_v50, %v2449_v57  ;;  %v2451_v53 = vshrl.u32 %v4639_v37, 16  ;;  %v4694_v56 = vrot.slane %v2011_v28, 1  ;;  %v1709_v37 = vld [vmem:[%s3674_s28 + $0x44] sm:$0xf]  ;;  %vm5061_vm2 = vmmov %vm5025_vm3 }
  0xf5   : > { %vm5062_vm7 = vmmov %vm5061_vm2 }
  0xf6   : > { %v2453_v9 = vor.u32 %v2451_v53, %v2449_v57  ;;  %vm5063_vm11 = vmmov %vm5061_vm2  ;;  %v2459_v53 = vshrl.u32 %v4684_v13, 16 }
  0xf7   : > { %v1461_v39 = vpop.f32.mrf.mxu2 }
  0xf8   : > { %v1491_v61 = vadd.f32 %v1461_v39, %v1057_v44  ;;  %v1655_v58 = vpop.f32.mrf.mxu3  ;;  %v2455_v44 = vshll.u32 %v4684_v13, 16 }
  0xf9   : > { %v1030_v1 = vpop.f32.mrf.mxu1 }
  0xfa   : > { %v1685_v27 = vadd.f32 %v1655_v58, %v1491_v61  ;;  %v1058_v60 = vadd.f32 %v1030_v1, %v4391_v43  ;;  %v2154_v43 = vld [vmem:[%s3674_s28 + $0x38] sm:$0xf]  ;;  %v2457_v23 = vrot.slane %v2455_v44, 1  ;;  %v1708_v58 = vld [vmem:[%s3674_s28 + $0x40] sm:$0xf] }
  0xfb   : > { %v1908_v7 = vpop.f32.mrf.mxu0  ;;  %v2170_v16 = vsel %vm5057_vm8, %v2154_v43, 0  ;;  %v2353_v1 = vld [vmem:[%s3674_s28 + $0x4c] sm:$0xf]  ;;  %vm5070_vm8 = vmmov %vm5061_vm2 }
  0xfc   : > { %3298 = vmatmul.msk.bf16.gmra.mxu1 %vm5054_vm13, %v2024_v24  ;;  %3330 = vmatmul.msk.bf16.gmra.mxu2 %vm5055_vm5, %v2221_v51  ;;  %v4678_v62 = vadd.f32 %v1905_v29, %v1685_v27  ;;  %v2655_v29 = vpack.c.b16 %v2645_v48, %v2644_v52  ;;  %v2211_v4 = vunpack.c.l.b16 %v2170_v16  ;;  %v2352_v51 = vld [vmem:[%s3674_s28 + $0x48] sm:$0xf]  ;;  %v2458_v27 = vsel %vm5059_vm10, %v2453_v9, %v2457_v23  ;;  %vm5064_vm13 = vmmov %vm5061_vm2 }
  0xfd   : > { %3394 = vmatmul.msk.bf16.gmra.mxu3 %vm5025_vm3, %v2450_v59  ;;  %v2603_v46 = vsel %vm4327_vm0, %v2352_v51, 0  ;;  %v2604_v41 = vsel %vm4333_vm12, %v2353_v1, 0  ;;  %v4725_v48 = vld [vmem:[%s3674_s28 + $0x48] sm:$0xff]  ;;  %v2354_v1 = vld [vmem:[%s3674_s28 + $0x50] sm:$0x1]  ;;  %vm5067_vm5 = vmmov %vm5059_vm10 }
  0xfe   : > { %3426 = vmatmul.msk.bf16.gmra.mxu0 %vm5056_vm6, %v2668_v2  ;;  %v2669_v61 = vrot.slane %v2655_v29, 1  ;;  %v2222_v33 = vpack.c.b16 %v2212_v17, %v2211_v4  ;;  %v2646_v5 = vunpack.c.l.b16 %v2603_v46  ;;  %v2647_v0 = vunpack.c.l.b16 %v2604_v41  ;;  %vm5068_vm3 = vmmov %vm5060_vm9 }
  0xff   : > { %v1464_v30 = vpop.f32.mrf.mxu2  ;;  %v2463_v44 = vshll.u32 %v4725_v48, 16  ;;  %vm5069_vm6 = vmmov %vm5061_vm2 }
 0x100   : > { %v1492_v32 = vadd.f32 %v1464_v30, %v1058_v60  ;;  %v1658_v18 = vpop.f32.mrf.mxu3  ;;  %v2670_v57 = vsel %vm5060_vm9, %v4654_v45, %v2669_v61  ;;  %v1959_v60 = vsel %vm4327_vm0, %v1708_v58, 0  ;;  %v2157_v30 = vld [vmem:[%s3674_s28 + $0x44] sm:$0xf]  ;;  %vm5065_vm0 = vnez %v4900_v38  ;;  %vm5072_vm10 = vmmov %vm5061_vm2 }
 0x101   : > { %v1032_v26 = vpop.f32.mrf.mxu1  ;;  %v2002_v45 = vunpack.c.l.b16 %v1959_v60  ;;  %v2173_v35 = vsel %vm3657_vm1, %v2157_v30, 0  ;;  %v2656_v29 = vpack.c.b16 %v2647_v0, %v2646_v5  ;;  %v2461_v58 = vor.u32 %v2459_v53, %v2457_v23 }
 0x102   : > { %v1686_v31 = vadd.f32 %v1658_v18, %v1492_v32  ;;  %v1059_v20 = vadd.f32 %v1032_v26, %v4412_v34  ;;  %v2026_v34 = vsel %vm5058_vm14, %v4650_v19, %v4694_v56  ;;  %v2214_v17 = vunpack.c.l.b16 %v2173_v35  ;;  %vm5071_vm14 = vmmov %vm5061_vm2 }
 0x103   : > { %v1910_v50 = vpop.f32.mrf.mxu0  ;;  %v1961_v60 = vsel %vm4362_vm15, %v4367_v42, 0  ;;  %v2467_v0 = vshrl.u32 %v4725_v48, 16 }
 0x104   : > { %v4696_v39 = vadd.f32 %v1908_v7, %v1686_v31  ;;  %v1960_v7 = vsel %vm4333_vm12, %v1709_v37, 0  ;;  %v2465_v37 = vrot.slane %v2463_v44, 1  ;;  %vm5066_vm12 = vmmov %vm5060_vm9 }
 0x105   : > { %v2003_v43 = vunpack.c.l.b16 %v1960_v7  ;;  %v2397_v7 = vunpack.c.l.b16 %v2354_v1  ;;  %vm5077_vm9 = vmmov %vm5061_vm2 }
 0x106   : > { %v2469_v44 = vor.u32 %v2467_v0, %v2465_v37 }
 0x107   : > { %v1466_v24 = vpop.f32.mrf.mxu2  ;;  %v2012_v28 = vpack.c.b16 %v2003_v43, %v2002_v45 }
 0x108   : > { %v1493_v59 = vadd.f32 %v1466_v24, %v1059_v20  ;;  %v1660_v2 = vpop.f32.mrf.mxu3  ;;  %v2671_v24 = vrot.slane %v2656_v29, 1 }
 0x109   : > { %v1035_v25 = vpop.f32.mrf.mxu1  ;;  %v2027_v38 = vrot.slane %v2012_v28, 1 }
 0x10a   : > { %v1687_v21 = vadd.f32 %v1660_v2, %v1493_v59  ;;  %v1060_v11 = vadd.f32 %v1035_v25, %v4454_v47  ;;  %v2156_v47 = vld [vmem:[%s3674_s28 + $0x40] sm:$0xf]  ;;  %v2672_v25 = vsel %vm5068_vm3, %v2669_v61, %v2671_v24  ;;  %v2158_v61 = vld [vmem:[%s3674_s28 + $0x48] sm:$0xf] }
 0x10b   : > { %v1913_v19 = vpop.f32.mrf.mxu0  ;;  %v2172_v16 = vsel %vm5065_vm0, %v2156_v47, 0  ;;  %v2174_v47 = vsel %vm5006_vm4, %v2158_v61, 0 }
 0x10c   : > { %3299 = vmatmul.msk.bf16.gmra.mxu1 %vm5061_vm2, %v2026_v34  ;;  %3331 = vmatmul.msk.bf16.gmra.mxu2 %vm5062_vm7, %v2222_v33  ;;  %v4719_v52 = vadd.f32 %v1910_v50, %v1687_v21  ;;  %v2213_v4 = vunpack.c.l.b16 %v2172_v16  ;;  %v2028_v33 = vsel %vm5066_vm12, %v4694_v56, %v2027_v38  ;;  %v2605_v21 = vsel %vm4362_vm15, %v2354_v1, 0  ;;  %vm5075_vm15 = vmmov %vm5067_vm5 }
 0x10d   : > { %3395 = vmatmul.msk.bf16.gmra.mxu3 %vm5063_vm11, %v2458_v27  ;;  %v2648_v46 = vunpack.c.l.b16 %v2605_v21  ;;  %v2215_v16 = vunpack.c.l.b16 %v2174_v47  ;;  %vm5078_vm7 = vmmov %vm5061_vm2 }
 0x10e   : > { %3427 = vmatmul.msk.bf16.gmra.mxu0 %vm5064_vm13, %v2670_v57  ;;  %v2223_v13 = vpack.c.b16 %v2214_v17, %v2213_v4  ;;  %vm5079_vm11 = vmmov %vm5061_vm2  ;;  %vm2868_vm13 = vcmask 519168  }
 0x10f   : > { %v1469_v40 = vpop.f32.mrf.mxu2  ;;  %v2657_v28 = vpack.c.b16 %v2648_v46, %v2648_v46 }
 0x110   : > { %v1494_v32 = vadd.f32 %v1469_v40, %v1060_v11  ;;  %v1663_v18 = vpop.f32.mrf.mxu3  ;;  %v2159_v11 = vld [vmem:[%s3674_s28 + $0x4c] sm:$0xf]  ;;  %s3432_s28 = sshll.u32 %s5086_s15, 6 }
 0x111   : > { %v1037_v26 = vpop.f32.mrf.mxu1  ;;  %v2175_v5 = vsel %vm3657_vm1, %v2159_v11, 0  ;;  %v2673_v12 = vrot.slane %v2657_v28, 1  ;;  %vm5073_vm1 = vmmov %vm5068_vm3  ;;  %s4781_s10 = scalar_lea.vmem %s4858_s3, %s3432_s28  ;;  %s4791_s12 = scalar_lea.vmem %s4859_s4, %s3432_s28 }
 0x112   : > { %v1688_v31 = vadd.f32 %v1663_v18, %v1494_v32  ;;  %v1061_v20 = vadd.f32 %v1037_v26, %v4477_v3  ;;  %v2466_v3 = vsel %vm5067_vm5, %v2461_v58, %v2465_v37  ;;  %v2216_v26 = vunpack.c.l.b16 %v2175_v5  ;;  %vm5076_vm4 = vmmov %vm5073_vm1  ;;  %v3495_v46 = vld [vmem:[%s4781_s10] sm:$0xff]  }
 0x113   : > { %v1915_v50 = vpop.f32.mrf.mxu0 }
 0x114   : > { %v4735_v9 = vadd.f32 %v1913_v19, %v1688_v31  ;;  %v2406_v19 = vpack.c.b16 %v2397_v7, %v2397_v7 }
 0x116   : > { %v2471_v18 = vshll.u32 %v2406_v19, 16 }
 0x117   : > { %v1471_v51 = vpop.f32.mrf.mxu2 }
 0x118   : > { %v1495_v59 = vadd.f32 %v1471_v51, %v1061_v20  ;;  %v1665_v2 = vpop.f32.mrf.mxu3  ;;  %v2473_v29 = vrot.slane %v2471_v18, 1 }
 0x119   : > { %v1040_v34 = vpop.f32.mrf.mxu1 }
 0x11a   : > { %v1689_v27 = vadd.f32 %v1665_v2, %v1495_v59  ;;  %v1062_v23 = vadd.f32 %v1040_v34, %v4396_v54  ;;  %v2004_v54 = vunpack.c.l.b16 %v1961_v60  ;;  %v2474_v1 = vsel %vm5075_vm15, %v2469_v44, %v2473_v29 }
 0x11b   : > { %v1918_v57 = vpop.f32.mrf.mxu0  ;;  %v2674_v59 = vsel %vm5076_vm4, %v2671_v24, %v2673_v12 }
 0x11c   : > { %3300 = vmatmul.msk.bf16.gmra.mxu1 %vm5069_vm6, %v2028_v33  ;;  %3332 = vmatmul.msk.bf16.gmra.mxu2 %vm5070_vm8, %v2223_v13  ;;  %v4750_v56 = vadd.f32 %v1915_v50, %v1689_v27  ;;  %v2013_v43 = vpack.c.b16 %v2004_v54, %v2004_v54  ;;  %v2224_v50 = vpack.c.b16 %v2216_v26, %v2215_v16 }
 0x11d   : > { %3396 = vmatmul.msk.bf16.gmra.mxu3 %vm5071_vm14, %v2466_v3  ;;  %v5080_v3 = vld [vmem:[#allocation3_spill] sm:$0xff] }
 0x11e   : > { %3428 = vmatmul.msk.bf16.gmra.mxu0 %vm5072_vm10, %v2672_v25  ;;  %v2029_v53 = vrot.slane %v2013_v43, 1  ;;  %v3496_v43 = vunpack.c.l.bf16 %v3495_v46 }
 0x11f   : > { %v1474_v42 = vpop.f32.mrf.mxu2 }
 0x120   : > { %v1496_v41 = vadd.f32 %v1474_v42, %v1062_v23  ;;  %v1668_v45 = vpop.f32.mrf.mxu3  ;;  %v2030_v48 = vsel %vm5073_vm1, %v2027_v38, %v2029_v53  ;;  %v3497_v53 = vunpack.c.h.bf16 %v3495_v46 }
 0x121   : > { %v1042_v22 = vpop.f32.mrf.mxu1 }
 0x122   : > { %v1690_v30 = vadd.f32 %v1668_v45, %v1496_v41  ;;  %v1063_v40 = vadd.f32 %v1042_v22, %v4420_v6  ;;  %v5074_v6 = vld [vmem:[#allocation2_spill] sm:$0xff] }
 0x123   : > { %v1920_v32 = vpop.f32.mrf.mxu0 }
 0x124   : > { %v4762_v35 = vadd.f32 %v1918_v57, %v1690_v30 }
 0x127   : > { %v1476_v31 = vpop.f32.mrf.mxu2 }
 0x128   : > { %v1497_v20 = vadd.f32 %v1476_v31, %v1063_v40  ;;  %v1670_v8 = vpop.f32.mrf.mxu3 }
 0x129   : > { %v1045_v4 = vpop.f32.mrf.mxu1 }
 0x12a   : > { %v1691_v17 = vadd.f32 %v1670_v8, %v1497_v20  ;;  %v1064_v58 = vadd.f32 %v1045_v4, %v5074_v6  ;;  %v3526_v20 = vld [vmem:[%s4781_s10 + $0x8] sm:$0xff]  }
 0x12b   : > { %v1923_v51 = vpop.f32.mrf.mxu0 }
 0x12c   : > { %3301 = vmatmul.msk.bf16.gmra.mxu1 %vm5077_vm9, %v2030_v48  ;;  %3333 = vmatmul.msk.bf16.gmra.mxu2 %vm5061_vm2, %v2224_v50  ;;  %v4770_v37 = vadd.f32 %v1920_v32, %v1691_v17 }
 0x12d   : > { %3397 = vmatmul.msk.bf16.gmra.mxu3 %vm5078_vm7, %v2474_v1 }
 0x12e   : > { %3429 = vmatmul.msk.bf16.gmra.mxu0 %vm5079_vm11, %v2674_v59 }
 0x12f   : > { %v1479_v38 = vpop.f32.mrf.mxu2 }
 0x130   : > { %v1498_v2 = vadd.f32 %v1479_v38, %v1064_v58  ;;  %v1673_v13 = vpop.f32.mrf.mxu3  ;;  %v3500_v58 = vunpack.c.l.bf16 %v3526_v20 }
 0x131   : > { %v1047_v34 = vpop.f32.mrf.mxu1 }
 0x132   : > { %v1692_v33 = vadd.f32 %v1673_v13, %v1498_v2  ;;  %v1065_v25 = vadd.f32 %v1047_v34, %v5080_v3 }
 0x133   : > { %v1925_v27 = vpop.f32.mrf.mxu0 }
 0x134   : > { %v4775_v24 = vadd.f32 %v1923_v51, %v1692_v33 }
 0x137   : > { %v1481_v23 = vpop.f32.mrf.mxu2 }
 0x138   : > { %v1499_v57 = vadd.f32 %v1481_v23, %v1065_v25  ;;  %v1675_v60 = vpop.f32.mrf.mxu3 }
 0x139   : > { %v2088_v7 = vpop.f32.mrf.mxu1 }
 0x13a   : > { %v1693_v21 = vadd.f32 %v1675_v60, %v1499_v57  ;;  %v2128_v11 = vadd.f32 %v2088_v7, %v4514_v10 }
 0x13b   : > { %v2732_v54 = vpop.f32.mrf.mxu0 }
 0x13c   : > { %v4783_v61 = vadd.f32 %v1925_v27, %v1693_v21  ;;  %v3501_v27 = vunpack.c.h.bf16 %v3526_v20 }
 0x13f   : > { %v2282_v19 = vpop.f32.mrf.mxu2 }
 0x140   : > { %v2322_v42 = vadd.f32 %v2282_v19, %v2128_v11  ;;  %v2532_v41 = vpop.f32.mrf.mxu3 }
 0x141   : > { %v2090_v45 = vpop.f32.mrf.mxu1 }
 0x142   : > { %v2572_v22 = vadd.f32 %v2532_v41, %v2322_v42  ;;  %v2129_v30 = vadd.f32 %v2090_v45, %v4541_v63 }
 0x143   : > { %v2734_v47 = vpop.f32.mrf.mxu0 }
 0x144   : > { %v2772_v5 = vadd.f32 %v2732_v54, %v2572_v22  ;;  %v3527_v54 = vld [vmem:[%s4781_s10 + $0x10] sm:$0xff]  }
 0x145   : > { %v3504_v45 = vunpack.c.l.bf16 %v3527_v54 }
 0x146   : > { %v2820_v0 = vadd.f32 %v3496_v43, %v2772_v5 }
 0x147   : > { %v2284_v40 = vpop.f32.mrf.mxu2 }
 0x148   : > { %v2836_v32 = vmax.f32 %v2820_v0, 0.0  ;;  %v2323_v18 = vadd.f32 %v2284_v40, %v2129_v30  ;;  %v2534_v28 = vpop.f32.mrf.mxu3 }
 0x149   : > { %v2093_v10 = vpop.f32.mrf.mxu1 }
 0x14a   : > { %v2852_v16 = vpack.c.bf16 %v2836_v32, %v2836_v32  ;;  %v2573_v26 = vadd.f32 %v2534_v28, %v2323_v18  ;;  %v2130_v12 = vadd.f32 %v2093_v10, %v4560_v36  ;;  %v3505_v10 = vunpack.c.h.bf16 %v3527_v54 }
 0x14b   : > { %v2737_v44 = vpop.f32.mrf.mxu0 }
 0x14c   : > { %2869 = vst.msk [vmem:[%s4791_s12] sm:$0xf] %vm2868_vm13, %v2852_v16  ;;  %v2773_v63 = vadd.f32 %v2734_v47, %v2573_v26 }
 0x14e   : > { %v2821_v29 = vadd.f32 %v3497_v53, %v2773_v63 }
 0x14f   : > { %v2287_v31 = vpop.f32.mrf.mxu2 }
 0x150   : > { %v2837_v8 = vmax.f32 %v2821_v29, 0.0  ;;  %v2324_v50 = vadd.f32 %v2287_v31, %v2130_v12  ;;  %v2537_v4 = vpop.f32.mrf.mxu3  ;;  %v3528_v29 = vld [vmem:[%s4781_s10 + $0x18] sm:$0xff]  }
 0x151   : > { %v2095_v48 = vpop.f32.mrf.mxu1 }
 0x152   : > { %v2853_v17 = vpack.c.bf16 %v2837_v8, %v2837_v8  ;;  %v2574_v6 = vadd.f32 %v2537_v4, %v2324_v50  ;;  %v2131_v38 = vadd.f32 %v2095_v48, %v4587_v14  ;;  %v3508_v4 = vunpack.c.l.bf16 %v3528_v29 }
 0x153   : > { %v2739_v51 = vpop.f32.mrf.mxu0 }
 0x154   : > { %2870 = vst.msk [vmem:[%s4791_s12 + $0x4] sm:$0xf] %vm2868_vm13, %v2853_v17  ;;  %v2774_v1 = vadd.f32 %v2737_v44, %v2574_v6 }
 0x156   : > { %v2822_v59 = vadd.f32 %v3500_v58, %v2774_v1 }
 0x157   : > { %v2289_v2 = vpop.f32.mrf.mxu2 }
 0x158   : > { %v2838_v36 = vmax.f32 %v2822_v59, 0.0  ;;  %v2325_v13 = vadd.f32 %v2289_v2, %v2131_v38  ;;  %v2539_v34 = vpop.f32.mrf.mxu3 }
 0x159   : > { %v2098_v33 = vpop.f32.mrf.mxu1 }
 0x15a   : > { %v2854_v3 = vpack.c.bf16 %v2838_v36, %v2838_v36  ;;  %v2575_v25 = vadd.f32 %v2539_v34, %v2325_v13  ;;  %v2132_v7 = vadd.f32 %v2098_v33, %v4606_v55  ;;  %v3509_v13 = vunpack.c.h.bf16 %v3528_v29 }
 0x15b   : > { %v2742_v23 = vpop.f32.mrf.mxu0 }
 0x15c   : > { %2871 = vst.msk [vmem:[%s4791_s12 + $0x8] sm:$0xf] %vm2868_vm13, %v2854_v3  ;;  %v2775_v57 = vadd.f32 %v2739_v51, %v2575_v25 }
 0x15e   : > { %v2823_v60 = vadd.f32 %v3501_v27, %v2775_v57 }
 0x15f   : > { %v2292_v21 = vpop.f32.mrf.mxu2 }
 0x160   : > { %v2839_v11 = vmax.f32 %v2823_v60, 0.0  ;;  %v2326_v14 = vadd.f32 %v2292_v21, %v2132_v7  ;;  %v2542_v19 = vpop.f32.mrf.mxu3 }
 0x161   : > { %v2100_v46 = vpop.f32.mrf.mxu1 }
 0x162   : > { %v2855_v42 = vpack.c.bf16 %v2839_v11, %v2839_v11  ;;  %v2576_v41 = vadd.f32 %v2542_v19, %v2326_v14  ;;  %v2133_v5 = vadd.f32 %v2100_v46, %v4633_v49 }
 0x163   : > { %v2744_v22 = vpop.f32.mrf.mxu0 }
 0x164   : > { %2872 = vst.msk [vmem:[%s4791_s12 + $0xc] sm:$0xf] %vm2868_vm13, %v2855_v42  ;;  %v2776_v43 = vadd.f32 %v2742_v23, %v2576_v41  ;;  %v3529_v23 = vld [vmem:[%s4781_s10 + $0x20] sm:$0xff]  }
 0x165   : > { %v3512_v11 = vunpack.c.l.bf16 %v3529_v23 }
 0x166   : > { %v2824_v47 = vadd.f32 %v3504_v45, %v2776_v43 }
 0x167   : > { %v2294_v0 = vpop.f32.mrf.mxu2 }
 0x168   : > { %v2840_v55 = vmax.f32 %v2824_v47, 0.0  ;;  %v2327_v30 = vadd.f32 %v2294_v0, %v2133_v5  ;;  %v2544_v40 = vpop.f32.mrf.mxu3  ;;  %v3513_v0 = vunpack.c.h.bf16 %v3529_v23 }
 0x169   : > { %v2103_v32 = vpop.f32.mrf.mxu1 }
 0x16a   : > { %v2856_v18 = vpack.c.bf16 %v2840_v55, %v2840_v55  ;;  %v2577_v28 = vadd.f32 %v2544_v40, %v2327_v30  ;;  %v2134_v44 = vadd.f32 %v2103_v32, %v4652_v15 }
 0x16b   : > { %v2747_v16 = vpop.f32.mrf.mxu0 }
 0x16c   : > { %2873 = vst.msk [vmem:[%s4791_s12 + $0x10] sm:$0xf] %vm2868_vm13, %v2856_v18  ;;  %v2777_v26 = vadd.f32 %v2744_v22, %v2577_v28  ;;  %v3530_v28 = vld [vmem:[%s4781_s10 + $0x28] sm:$0xff]  }
 0x16e   : > { %v2825_v53 = vadd.f32 %v3505_v10, %v2777_v26 }
 0x16f   : > { %v2297_v63 = vpop.f32.mrf.mxu2 }
 0x170   : > { %v2841_v12 = vmax.f32 %v2825_v53, 0.0  ;;  %v2328_v49 = vadd.f32 %v2297_v63, %v2134_v44  ;;  %v2547_v31 = vpop.f32.mrf.mxu3  ;;  %v3516_v63 = vunpack.c.l.bf16 %v3530_v28 }
 0x171   : > { %v2105_v20 = vpop.f32.mrf.mxu1 }
 0x172   : > { %v2857_v8 = vpack.c.bf16 %v2841_v12, %v2841_v12  ;;  %v2578_v50 = vadd.f32 %v2547_v31, %v2328_v49  ;;  %v2135_v58 = vadd.f32 %v2105_v20, %v4678_v62 }
 0x173   : > { %v2749_v48 = vpop.f32.mrf.mxu0 }
 0x174   : > { %2874 = vst.msk [vmem:[%s4791_s12 + $0x14] sm:$0xf] %vm2868_vm13, %v2857_v8  ;;  %v2778_v17 = vadd.f32 %v2747_v16, %v2578_v50 }
 0x176   : > { %v2826_v6 = vadd.f32 %v3508_v4, %v2778_v17 }
 0x177   : > { %v2299_v51 = vpop.f32.mrf.mxu2 }
 0x178   : > { %v2842_v15 = vmax.f32 %v2826_v6, 0.0  ;;  %v2329_v1 = vadd.f32 %v2299_v51, %v2135_v58  ;;  %v2549_v59 = vpop.f32.mrf.mxu3  ;;  %v3517_v6 = vunpack.c.h.bf16 %v3530_v28 }
 0x179   : > { %v2108_v38 = vpop.f32.mrf.mxu1 }
 0x17a   : > { %v2858_v2 = vpack.c.bf16 %v2842_v15, %v2842_v15  ;;  %v2579_v36 = vadd.f32 %v2549_v59, %v2329_v1  ;;  %v2136_v25 = vadd.f32 %v2108_v38, %v4696_v39  ;;  %v3531_v38 = vld [vmem:[%s4781_s10 + $0x30] sm:$0xff]  }
 0x17b   : > { %v2752_v34 = vpop.f32.mrf.mxu0 }
 0x17c   : > { %2875 = vst.msk [vmem:[%s4791_s12 + $0x18] sm:$0xf] %vm2868_vm13, %v2858_v2  ;;  %v2779_v33 = vadd.f32 %v2749_v48, %v2579_v36 }
 0x17e   : > { %v2827_v3 = vadd.f32 %v3509_v13, %v2779_v33 }
 0x17f   : > { %v2302_v27 = vpop.f32.mrf.mxu2 }
 0x180   : > { %v2843_v57 = vmax.f32 %v2827_v3, 0.0  ;;  %v2330_v62 = vadd.f32 %v2302_v27, %v2136_v25  ;;  %v2552_v60 = vpop.f32.mrf.mxu3  ;;  %v3520_v3 = vunpack.c.l.bf16 %v3531_v38 }
 0x181   : > { %v2110_v7 = vpop.f32.mrf.mxu1 }
 0x182   : > { %v2859_v21 = vpack.c.bf16 %v2843_v57, %v2843_v57  ;;  %v2580_v54 = vadd.f32 %v2552_v60, %v2330_v62  ;;  %v2137_v42 = vadd.f32 %v2110_v7, %v4719_v52 }
 0x183   : > { %v2754_v14 = vpop.f32.mrf.mxu0 }
 0x184   : > { %2876 = vst.msk [vmem:[%s4791_s12 + $0x1c] sm:$0xf] %vm2868_vm13, %v2859_v21  ;;  %v2780_v19 = vadd.f32 %v2752_v34, %v2580_v54 }
 0x186   : > { %v2828_v46 = vadd.f32 %v3512_v11, %v2780_v19 }
 0x187   : > { %v2304_v41 = vpop.f32.mrf.mxu2 }
 0x188   : > { %v2844_v39 = vmax.f32 %v2828_v46, 0.0  ;;  %v2331_v45 = vadd.f32 %v2304_v41, %v2137_v42  ;;  %v2554_v22 = vpop.f32.mrf.mxu3 }
 0x189   : > { %v2113_v43 = vpop.f32.mrf.mxu1 }
 0x18a   : > { %v2860_v47 = vpack.c.bf16 %v2844_v39, %v2844_v39  ;;  %v2581_v5 = vadd.f32 %v2554_v22, %v2331_v45  ;;  %v2138_v32 = vadd.f32 %v2113_v43, %v4735_v9  ;;  %v3532_v39 = vld [vmem:[%s4781_s10 + $0x38] sm:$0xff]  }
 0x18b   : > { %v2757_v55 = vpop.f32.mrf.mxu0 }
 0x18c   : > { %2877 = vst.msk [vmem:[%s4791_s12 + $0x20] sm:$0xf] %vm2868_vm13, %v2860_v47  ;;  %v2781_v30 = vadd.f32 %v2754_v14, %v2581_v5  ;;  %v3521_v14 = vunpack.c.h.bf16 %v3531_v38 }
 0x18e   : > { %v2829_v40 = vadd.f32 %v3513_v0, %v2781_v30  ;;  %v3524_v0 = vunpack.c.l.bf16 %v3532_v39 }
 0x18f   : > { %v2307_v18 = vpop.f32.mrf.mxu2 }
 0x190   : > { %v2845_v10 = vmax.f32 %v2829_v40, 0.0  ;;  %v2332_v52 = vadd.f32 %v2307_v18, %v2138_v32  ;;  %v2557_v16 = vpop.f32.mrf.mxu3 }
 0x191   : > { %v2115_v26 = vpop.f32.mrf.mxu1 }
 0x192   : > { %v2861_v53 = vpack.c.bf16 %v2845_v10, %v2845_v10  ;;  %v2582_v44 = vadd.f32 %v2557_v16, %v2332_v52  ;;  %v2139_v31 = vadd.f32 %v2115_v26, %v4750_v56  ;;  %v3525_v26 = vunpack.c.h.bf16 %v3532_v39 }
 0x193   : > { %v2759_v29 = vpop.f32.mrf.mxu0 }
 0x194   : > { %2878 = vst.msk [vmem:[%s4791_s12 + $0x24] sm:$0xf] %vm2868_vm13, %v2861_v53  ;;  %v2782_v12 = vadd.f32 %v2757_v55, %v2582_v44 }
 0x196   : > { %v2830_v49 = vadd.f32 %v3516_v63, %v2782_v12 }
 0x197   : > { %v2309_v20 = vpop.f32.mrf.mxu2 }
 0x198   : > { %v2846_v9 = vmax.f32 %v2830_v49, 0.0  ;;  %v2333_v8 = vadd.f32 %v2309_v20, %v2139_v31  ;;  %v2559_v50 = vpop.f32.mrf.mxu3 }
 0x199   : > { %v2118_v4 = vpop.f32.mrf.mxu1 }
 0x19a   : > { %v2862_v48 = vpack.c.bf16 %v2846_v9, %v2846_v9  ;;  %v2583_v17 = vadd.f32 %v2559_v50, %v2333_v8  ;;  %v2140_v1 = vadd.f32 %v2118_v4, %v4762_v35 }
 0x19b   : > { %v2762_v51 = vpop.f32.mrf.mxu0 }
 0x19c   : > { %2879 = vst.msk [vmem:[%s4791_s12 + $0x28] sm:$0xf] %vm2868_vm13, %v2862_v48  ;;  %v2783_v58 = vadd.f32 %v2759_v29, %v2583_v17 }
 0x19e   : > { %v2831_v15 = vadd.f32 %v3517_v6, %v2783_v58 }
 0x19f   : > { %v2312_v59 = vpop.f32.mrf.mxu2 }
 0x1a0   : > { %v2847_v2 = vmax.f32 %v2831_v15, 0.0  ;;  %v2334_v56 = vadd.f32 %v2312_v59, %v2140_v1  ;;  %v2562_v36 = vpop.f32.mrf.mxu3 }
 0x1a1   : > { %v2120_v13 = vpop.f32.mrf.mxu1 }
 0x1a2   : > { %v2863_v34 = vpack.c.bf16 %v2847_v2, %v2847_v2  ;;  %v2584_v33 = vadd.f32 %v2562_v36, %v2334_v56  ;;  %v2141_v23 = vadd.f32 %v2120_v13, %v4770_v37 }
 0x1a3   : > { %v2764_v57 = vpop.f32.mrf.mxu0 }
 0x1a4   : > { %2880 = vst.msk [vmem:[%s4791_s12 + $0x2c] sm:$0xf] %vm2868_vm13, %v2863_v34  ;;  %v2784_v25 = vadd.f32 %v2762_v51, %v2584_v33 }
 0x1a6   : > { %v2832_v27 = vadd.f32 %v3520_v3, %v2784_v25 }
 0x1a7   : > { %v2314_v62 = vpop.f32.mrf.mxu2 }
 0x1a8   : > { %v2848_v35 = vmax.f32 %v2832_v27, 0.0  ;;  %v2335_v60 = vadd.f32 %v2314_v62, %v2141_v23  ;;  %v2564_v7 = vpop.f32.mrf.mxu3 }
 0x1a9   : > { %v2123_v21 = vpop.f32.mrf.mxu1 }
 0x1aa   : > { %v2864_v54 = vpack.c.bf16 %v2848_v35, %v2848_v35  ;;  %v2585_v11 = vadd.f32 %v2564_v7, %v2335_v60  ;;  %v2142_v42 = vadd.f32 %v2123_v21, %v4775_v24 }
 0x1ab   : > { %v2767_v43 = vpop.f32.mrf.mxu0 }
 0x1ac   : > { %2881 = vst.msk [vmem:[%s4791_s12 + $0x30] sm:$0xf] %vm2868_vm13, %v2864_v54  ;;  %v2785_v19 = vadd.f32 %v2764_v57, %v2585_v11 }
 0x1ae   : > { %v2833_v46 = vadd.f32 %v3521_v14, %v2785_v19 }
 0x1af   : > { %v2317_v41 = vpop.f32.mrf.mxu2 }
 0x1b0   : > { %v2849_v45 = vmax.f32 %v2833_v46, 0.0  ;;  %v2336_v37 = vadd.f32 %v2317_v41, %v2142_v42  ;;  %v2567_v22 = vpop.f32.mrf.mxu3 }
 0x1b1   : > { %v2125_v55 = vpop.f32.mrf.mxu1 }
 0x1b2   : > { %v2865_v47 = vpack.c.bf16 %v2849_v45, %v2849_v45  ;;  %v2586_v5 = vadd.f32 %v2567_v22, %v2336_v37  ;;  %v2143_v32 = vadd.f32 %v2125_v55, %v4783_v61 }
 0x1b3   : > { %v2769_v53 = vpop.f32.mrf.mxu0 }
 0x1b4   : > { %2882 = vst.msk [vmem:[%s4791_s12 + $0x34] sm:$0xf] %vm2868_vm13, %v2865_v47  ;;  %v2786_v30 = vadd.f32 %v2767_v43, %v2586_v5 }
 0x1b6   : > { %v2834_v40 = vadd.f32 %v3524_v0, %v2786_v30 }
 0x1b7   : > { %v2319_v18 = vpop.f32.mrf.mxu2 }
 0x1b8   : > { %v2850_v24 = vmax.f32 %v2834_v40, 0.0  ;;  %v2337_v28 = vadd.f32 %v2319_v18, %v2143_v32  ;;  %v2569_v10 = vpop.f32.mrf.mxu3 }
 0x1ba   : > { %v2866_v52 = vpack.c.bf16 %v2850_v24, %v2850_v24  ;;  %v2587_v16 = vadd.f32 %v2569_v10, %v2337_v28 }
 0x1bc   : > { %2883 = vst.msk [vmem:[%s4791_s12 + $0x38] sm:$0xf] %vm2868_vm13, %v2866_v52  ;;  %v2787_v44 = vadd.f32 %v2769_v53, %v2587_v16 }
 0x1be   : > { %v2835_v63 = vadd.f32 %v3525_v26, %v2787_v44 }
 0x1c0   : > { %v2851_v29 = vmax.f32 %v2835_v63, 0.0 }
 0x1c2   : > { %v2867_v12 = vpack.c.bf16 %v2851_v29, %v2851_v29 }
 0x1c4   : > { %2884 = vst.msk [vmem:[%s4791_s12 + $0x3c] sm:$0xf] %vm2868_vm13, %v2867_v12 }
 0x1c5 PF: > { %s14_s17 = sadd.s32 1, %s3595_s17   ;;  %s5081_s15 = smov %s3591_s16 }
 0x1c6   : > { %p11_p5 = scmp.ge.s32.totalorder %s14_s17, 4   ;;  %s5082_s16 = smov %s5084_s18 }
 0x1c8   :  { %13 = sbr.rel (!%p11_p5) target bundleno = 2 (0x2), region = 83 }

</bundles_post_ra>
